<compile_context>
chip_gen: v7x
topology: tpu7x:2x2x1
jax: 0.10.0
libtpu: 0.0.40
codegen_flags: <defaults>
</compile_context>

<pallas_src>
import functools

import jax
import jax.numpy as jnp
import numpy as np
from jax import lax
from jax.experimental import pallas as pl
from jax.experimental.pallas import tpu as pltpu


def _round_up(x, m):
    return -(-x // m) * m


def _make_kernel(cout, dtl, shifts):
    """One grid step: a single fused GEMM over all shift groups and DT depth planes.

    Refs:
      x_ref : (1, 1, Kp, Ltot)     im2col'ed input tile (Ltot = DT*L + 128 tail)
      w_ref : (M,  Kp)             shift-grouped, BN-folded weights (+ bias column)
      o_ref : (1, 1, Cout, DT*L)   lane-dense output tile
    """

    def kernel(x_ref, w_ref, o_ref):
        x = x_ref[0, 0]                                              # (Kp, Ltot)
        # Single MXU matmul: M = n_shifts*Cout rows, N = DT*L (+tail) lanes, f32 acc.
        y = jnp.dot(w_ref[...], x, preferred_element_type=jnp.float32)

        # Static lane-shifted adds of the n_shifts groups of the single result.
        # The 128-lane tail of x keeps every slice in bounds; shifted-in garbage
        # only lands in columns the wrapper discards.
        # TODO(synk): the shift could alternatively go through pltpu.roll (XLU slot).
        def group(g):
            s = shifts[g]
            return y[g * cout:(g + 1) * cout, s:s + dtl]

        acc = group(0)                 # group 0 has shift 0 and carries the BN bias
        for g in range(1, len(shifts)):
            acc = acc + group(g)

        o_ref[0, 0] = jnp.maximum(acc, 0.0).astype(o_ref.dtype)

    return kernel


def _pack_weights(w, scale, bias, *, sh, sw, n_oh, n_ow, kp, compute_dtype):
    """(Cout,Cin,KD,KH,KW) -> (n_shifts*Cout, Kp), shift-grouped and BN-scale folded,
    with the BN bias appended as an extra column (ridden by a ones-row in X).
    The index map is built in numpy at trace time; the packing itself is ONE gather.
    """
    cout, cin, kd_, kh_, kw_ = w.shape
    nph = sh * sw
    kc = nph * cin
    k = kd_ * kc
    m = n_oh * n_ow * cout
    n_w = w.size
    zero_slot = n_w + cout                                  # index of appended 0.0

    idx = np.full((m, kp), zero_slot, dtype=np.int32)
    for kh in range(kh_):
        oh, a = divmod(kh, sh)
        for kw in range(kw_):
            ow, b = divmod(kw, sw)
            g = oh * n_ow + ow
            for kd in range(kd_):
                col0 = kd * kc + (a * sw + b) * cin
                for co in range(cout):
                    row = g * cout + co
                    for ci in range(cin):
                        idx[row, col0 + ci] = (
                            ((co * cin + ci) * kd_ + kd) * kh_ + kh) * kw_ + kw
    idx[0:cout, k] = n_w + np.arange(cout)                  # bias col -> shift group 0

    w_eff = (w * scale[:, None, None, None, None]).astype(jnp.float32)
    src = jnp.concatenate([w_eff.reshape(-1),
                           bias.reshape(-1).astype(jnp.float32),
                           jnp.zeros((1,), jnp.float32)])
    return src[jnp.asarray(idx)].astype(compute_dtype)


def conv3d_bn_relu(x_ndchw, w, scale, bias, *, stride, padding,
                   compute_dtype=jnp.bfloat16, out_dtype=None,
                   vmem_block_budget=4 * 1024 * 1024):
    """Fused Conv3d(bias=False) + BatchNorm3d(eval, folded) + ReLU.

    x_ndchw : (N, D, Cin, H, W)       depth-major layout (cheap conv1->conv2 handoff;
                                       stride-1 convs need no polyphase transpose)
    w       : (Cout, Cin, KD, KH, KW) PyTorch OIDHW layout
    scale, bias : (Cout,)             folded BN affine (y = conv * scale + bias)
    returns : (N, D_out, Cout, H_out, W_out)
    """
    N, D, Cin, H, W = x_ndchw.shape
    Cout, Cin_w, KD, KH, KW = w.shape
    assert Cin == Cin_w
    sd, sh, sw = stride
    pd, ph, pw = padding
    assert sd == 1, "BasicBlock3d only uses depth stride 1"
    if out_dtype is None:
        out_dtype = compute_dtype
    cdt = compute_dtype

    D_out = D + 2 * pd - KD + 1
    H_out = (H + 2 * ph - KH) // sh + 1
    W_out = (W + 2 * pw - KW) // sw + 1
    n_oh = (KH - 1) // sh + 1                       # distinct H output shifts
    n_ow = (KW - 1) // sw + 1                       # distinct W output shifts
    Hph = max(-(-(H + 2 * ph) // sh), H_out + n_oh - 1)   # polyphase plane extents
    Wph = max(-(-(W + 2 * pw) // sw), W_out + n_ow - 1)
    NPH = sh * sw
    KC = NPH * Cin
    K = KD * KC
    Kp = _round_up(K + 1, 16)                       # +1 ones/bias row, sublane pad
    HW = Hph * Wph
    L_keep = H_out * Wph                            # kept columns per depth plane
    s_max = (n_oh - 1) * Wph + (n_ow - 1)
    L = _round_up(max(HW, L_keep + s_max), 128)     # lane-dense per-depth block

    # Depth tiling: as many output planes per grid step as the VMEM budget allows
    # (fat GEMM lane dim, fewer grid steps) while bounding the input block (v7x).
    itemsize = jnp.dtype(cdt).itemsize
    DT = int(max(1, min(D_out, vmem_block_budget // (Kp * L * itemsize))))
    n_tiles = -(-D_out // DT)
    D_out_p = n_tiles * DT

    # ---- input im2col: polyphase split (absorbs H/W strides) + KD depth windows ----
    Dq = D_out_p + KD - 1
    xq = jnp.pad(x_ndchw.astype(cdt),
                 ((0, 0), (pd, Dq - D - pd), (0, 0),
                  (ph, Hph * sh - H - ph), (pw, Wph * sw - W - pw)))
    if sh == 1 and sw == 1:
        xq = xq.reshape(N, Dq, KC, HW)              # stride 1: no polyphase transpose
    else:
        xq = xq.reshape(N, Dq, Cin, Hph, sh, Wph, sw)
        xq = xq.transpose(0, 1, 4, 6, 2, 3, 5)      # (N, Dq, sh, sw, Cin, Hph, Wph)
        xq = xq.reshape(N, Dq, KC, HW)

    win = np.arange(D_out_p)[:, None] + np.arange(KD)[None, :]   # (D_out_p, KD)
    xw = xq[:, win]                                 # (N, D_out_p, KD, KC, HW)
    xw = xw.reshape(N, n_tiles, DT, K, HW)
    xw = jnp.pad(xw, ((0, 0),) * 4 + ((0, L - HW),))             # lane-pad planes to L
    xw = xw.transpose(0, 1, 3, 2, 4).reshape(N, n_tiles, K, DT * L)
    Ltot = DT * L + 128                             # tail keeps shifted slices in bounds
    xw = jnp.pad(xw, ((0, 0), (0, 0), (0, 0), (0, 128)))
    rows = [xw, jnp.ones((N, n_tiles, 1, Ltot), cdt)]            # ones-row -> BN bias
    if Kp - K - 1 > 0:
        rows.append(jnp.zeros((N, n_tiles, Kp - K - 1, Ltot), cdt))
    xw = jnp.concatenate(rows, axis=2)              # (N, n_tiles, Kp, Ltot)

    # ---- weights: BN-scale folded, shift-grouped, bias column appended ----
    w_pk = _pack_weights(w, scale, bias, sh=sh, sw=sw, n_oh=n_oh, n_ow=n_ow,
                         kp=Kp, compute_dtype=cdt)  # (M, Kp)
    M = n_oh * n_ow * Cout

    shifts = tuple(oh * Wph + ow for oh in range(n_oh) for ow in range(n_ow))
    kernel = _make_kernel(Cout, DT * L, shifts)

    out = pl.pallas_call(
        kernel,
        out_shape=jax.ShapeDtypeStruct((N, n_tiles, Cout, DT * L), out_dtype),
        grid=(N, n_tiles),
        in_specs=[
            pl.BlockSpec((1, 1, Kp, Ltot), lambda n, t: (n, t, 0, 0)),
            pl.BlockSpec((M, Kp), lambda n, t: (0, 0)),
        ],
        out_specs=pl.BlockSpec((1, 1, Cout, DT * L), lambda n, t: (n, t, 0, 0)),
        compiler_params=pltpu.CompilerParams(
            dimension_semantics=("parallel", "parallel"),
            vmem_limit_bytes=32 * 1024 * 1024),
    )(xw, w_pk)

    # Unflatten: (N, n_tiles, Cout, DT, L) -> (N, D_out, Cout, H_out, W_out).
    out = out.reshape(N, n_tiles, Cout, DT, L).transpose(0, 1, 3, 2, 4)
    out = out.reshape(N, D_out_p, Cout, L)[:, :D_out, :, :L_keep]
    out = out.reshape(N, D_out, Cout, H_out, Wph)[..., :W_out]
    return out


def fold_bn(gamma, beta, mean, var, eps=1e-5):
    scale = gamma / jnp.sqrt(var + eps)
    return scale, beta - mean * scale


def basic_block_3d(x_ncdhw, p, compute_dtype=jnp.bfloat16):
    """Pallas implementation of BasicBlock3d.forward (eval-mode BatchNorm)."""
    s1, b1 = fold_bn(p["gamma1"], p["beta1"], p["mean1"], p["var1"])
    s2, b2 = fold_bn(p["gamma2"], p["beta2"], p["mean2"], p["var2"])
    y = jnp.transpose(x_ncdhw, (0, 2, 1, 3, 4))     # NCDHW -> NDCHW (once per block)
    y = conv3d_bn_relu(y, p["w1"], s1, b1, stride=(1, 2, 2), padding=(1, 3, 3),
                       compute_dtype=compute_dtype)
    y = conv3d_bn_relu(y, p["w2"], s2, b2, stride=(1, 1, 1), padding=(1, 1, 1),
                       compute_dtype=compute_dtype, out_dtype=jnp.float32)
    return jnp.transpose(y, (0, 2, 1, 3, 4))        # NDCHW -> NCDHW


def basic_block_3d_reference(x_ncdhw, p):
    """Pure-JAX reference (NCDHW, high-precision conv)."""
    def conv(a, w, stride, padding):
        return lax.conv_general_dilated(
            a, w, window_strides=stride, padding=[(q, q) for q in padding],
            dimension_numbers=("NCDHW", "OIDHW", "NCDHW"),
            precision=lax.Precision.HIGHEST)

    def bn_relu(y, s, b):
        s = s[None, :, None, None, None]
        b = b[None, :, None, None, None]
        return jnp.maximum(y * s + b, 0.0)

    s1, b1 = fold_bn(p["gamma1"], p["beta1"], p["mean1"], p["var1"])
    s2, b2 = fold_bn(p["gamma2"], p["beta2"], p["mean2"], p["var2"])
    y = bn_relu(conv(x_ncdhw, p["w1"], (1, 2, 2), (1, 3, 3)), s1, b1)
    y = bn_relu(conv(y, p["w2"], (1, 1, 1), (1, 1, 1)), s2, b2)
    return y


if __name__ == "__main__":
    key = jax.random.PRNGKey(0)
    keys = jax.random.split(key, 11)
    N, Cin, Cout, D, H, W = 2, 4, 8, 4, 16, 16

    # PyTorch-style NCDHW input / OIDHW weights.
    x = jax.random.normal(keys[0], (N, Cin, D, H, W), jnp.float32)
    params = dict(
        w1=0.1 * jax.random.normal(keys[1], (Cout, Cin, 3, 3, 3), jnp.float32),
        gamma1=1.0 + 0.1 * jax.random.normal(keys[2], (Cout,), jnp.float32),
        beta1=0.1 * jax.random.normal(keys[3], (Cout,), jnp.float32),
        mean1=0.1 * jax.random.normal(keys[4], (Cout,), jnp.float32),
        var1=1.0 + 0.1 * jax.random.uniform(keys[5], (Cout,), jnp.float32),
        w2=0.1 * jax.random.normal(keys[6], (Cout, Cout, 3, 3, 3), jnp.float32),
        gamma2=1.0 + 0.1 * jax.random.normal(keys[7], (Cout,), jnp.float32),
        beta2=0.1 * jax.random.normal(keys[8], (Cout,), jnp.float32),
        mean2=0.1 * jax.random.normal(keys[9], (Cout,), jnp.float32),
        var2=1.0 + 0.1 * jax.random.uniform(keys[10], (Cout,), jnp.float32),
    )

    ref = jax.block_until_ready(basic_block_3d_reference(x, params))

    # f32 path (tight-ish tolerance; slack only covers MXU f32-pass decomposition
    # vs XLA's conv — structural/indexing bugs would give O(1) errors).
    out_f32 = jax.block_until_ready(
        jax.jit(functools.partial(basic_block_3d, compute_dtype=jnp.float32))(x, params))
    assert out_f32.shape == (N, Cout, D, 10, 10), out_f32.shape
    np.testing.assert_allclose(np.asarray(out_f32), np.asarray(ref), rtol=3e-2, atol=3e-2)

    # Default bf16 MXU path (v6e/v7x native): bf16 activations/weights, f32 acc.
    out_bf16 = jax.block_until_ready(jax.jit(basic_block_3d)(x, params))
    assert out_bf16.shape == (N, Cout, D, 10, 10), out_bf16.shape
    np.testing.assert_allclose(np.asarray(out_bf16), np.asarray(ref), rtol=1e-1, atol=1e-1)

    print("KERNEL_OK")
</pallas_src>

<mosaic_0001>
module attributes {stable_mosaic.version = 11 : i64} {
  func.func private @main(%arg0: i32) attributes {dimension_semantics = [#tpu.dimension_semantics<core_parallel>], iteration_bounds = array<i64: 2>, tpu.core_type = #tpu.core_type<sc_scalar_subcore>, window_params = []} {
    return
  }
}

module attributes {stable_mosaic.version = 11 : i64} {
  func.func private @main(%arg0: i32) attributes {dimension_semantics = [#tpu.dimension_semantics<core_parallel>], iteration_bounds = array<i64: 2>, tpu.core_type = #tpu.core_type<sc_scalar_subcore>, window_params = []} {
    return
  }
}

module attributes {stable_mosaic.version = 11 : i64} {
  func.func @kernel(%arg0: i32, %arg1: i32, %arg2: memref<1x1x64x640xf32, #tpu.memory_space<vmem>>, %arg3: memref<32x64xf32, #tpu.memory_space<vmem>>, %arg4: memref<1x1x8x512xf32, #tpu.memory_space<vmem>>) attributes {dimension_semantics = [#tpu.dimension_semantics<parallel>, #tpu.dimension_semantics<parallel>], iteration_bounds = array<i64: 2, 1>, scalar_prefetch = 0 : i64, scratch_operands = 0 : i64, tpu.core_type = #tpu.core_type<tc>, window_params = [{transform_indices = @transform_0, window_bounds = array<i64: 1, 1, 64, 640>}, {pipeline_mode = #tpu.pipeline_mode<synchronous>, transform_indices = @transform_1, window_bounds = array<i64: 32, 64>}, {transform_indices = @transform_2, window_bounds = array<i64: 1, 1, 8, 512>}]} {
    %c0 = arith.constant 0 : index
    %c0_0 = arith.constant 0 : index
    %c0_1 = arith.constant 0 : index
    %c0_2 = arith.constant 0 : index
    %0 = vector.load %arg2[%c0, %c0_0, %c0_1, %c0_2] : memref<1x1x64x640xf32, #tpu.memory_space<vmem>>, vector<1x1x64x640xf32>
    %1 = vector.shape_cast %0 : vector<1x1x64x640xf32> to vector<64x640xf32>
    %c0_3 = arith.constant 0 : index
    %c0_4 = arith.constant 0 : index
    %2 = vector.load %arg3[%c0_3, %c0_4] : memref<32x64xf32, #tpu.memory_space<vmem>>, vector<32x64xf32>
    %cst = arith.constant dense<0.000000e+00> : vector<32x640xf32>
    %3 = tpu.matmul %2, %1, %cst {dimension_numbers = #tpu.dot_dimension_numbers<[1], [0], [0], [1], [0, 0, 1, 1], [], []>} : vector<32x64xf32>, vector<64x640xf32>, vector<32x640xf32> -> vector<32x640xf32>
    %4 = vector.extract_strided_slice %3 {offsets = [0, 0], sizes = [8, 512], strides = [1, 1]} : vector<32x640xf32> to vector<8x512xf32>
    %5 = vector.extract_strided_slice %3 {offsets = [8, 1], sizes = [8, 512], strides = [1, 1]} : vector<32x640xf32> to vector<8x512xf32>
    %6 = arith.addf %4, %5 : vector<8x512xf32>
    %7 = vector.extract_strided_slice %3 {offsets = [16, 11], sizes = [8, 512], strides = [1, 1]} : vector<32x640xf32> to vector<8x512xf32>
    %8 = arith.addf %6, %7 : vector<8x512xf32>
    %9 = vector.extract_strided_slice %3 {offsets = [24, 12], sizes = [8, 512], strides = [1, 1]} : vector<32x640xf32> to vector<8x512xf32>
    %10 = arith.addf %8, %9 : vector<8x512xf32>
    %cst_5 = arith.constant 0.000000e+00 : f32
    %11 = vector.broadcast %cst_5 : f32 to vector<8x512xf32>
    %12 = arith.maximumf %10, %11 : vector<8x512xf32>
    %c0_6 = arith.constant 0 : index
    %c0_7 = arith.constant 0 : index
    %c0_8 = arith.constant 0 : index
    %c0_9 = arith.constant 0 : index
    %13 = vector.load %arg4[%c0_6, %c0_7, %c0_8, %c0_9] : memref<1x1x8x512xf32, #tpu.memory_space<vmem>>, vector<1x1x8x512xf32>
    %14 = vector.shape_cast %13 : vector<1x1x8x512xf32> to vector<8x512xf32>
    %15 = vector.shape_cast %12 : vector<8x512xf32> to vector<1x1x8x512xf32>
    tpu.vector_store %arg4[%c0_6, %c0_7, %c0_8, %c0_9], %15 {strides = array<i32>} : memref<1x1x8x512xf32, #tpu.memory_space<vmem>>, vector<1x1x8x512xf32>,
    return
  }
  func.func @transform_0(%arg0: i32, %arg1: i32) -> (i32, i32, i32, i32) {
    %c0_i32 = arith.constant 0 : i32
    %c0_i32_0 = arith.constant 0 : i32
    %c0_i32_1 = arith.constant 0 : i32
    return %arg0, %arg1, %c0_i32, %c0_i32_0 : i32, i32, i32, i32
  }
  func.func @transform_1(%arg0: i32, %arg1: i32) -> (i32, i32) {
    %c0_i32 = arith.constant 0 : i32
    %c0_i32_0 = arith.constant 0 : i32
    %c0_i32_1 = arith.constant 0 : i32
    return %c0_i32, %c0_i32_0 : i32, i32
  }
  func.func @transform_2(%arg0: i32, %arg1: i32) -> (i32, i32, i32, i32) {
    %c0_i32 = arith.constant 0 : i32
    %c0_i32_0 = arith.constant 0 : i32
    %c0_i32_1 = arith.constant 0 : i32
    return %arg0, %arg1, %c0_i32, %c0_i32_0 : i32, i32, i32, i32
  }
}

module attributes {stable_mosaic.version = 11 : i64} {
  func.func @kernel(%arg0: i32, %arg1: i32, %arg2: memref<1x1x32x1152xf32, #tpu.memory_space<vmem>>, %arg3: memref<72x32xf32, #tpu.memory_space<vmem>>, %arg4: memref<1x1x8x1024xf32, #tpu.memory_space<vmem>>) attributes {dimension_semantics = [#tpu.dimension_semantics<parallel>, #tpu.dimension_semantics<parallel>], iteration_bounds = array<i64: 2, 1>, scalar_prefetch = 0 : i64, scratch_operands = 0 : i64, tpu.core_type = #tpu.core_type<tc>, window_params = [{transform_indices = @transform_0, window_bounds = array<i64: 1, 1, 32, 1152>}, {pipeline_mode = #tpu.pipeline_mode<synchronous>, transform_indices = @transform_1, window_bounds = array<i64: 72, 32>}, {transform_indices = @transform_2, window_bounds = array<i64: 1, 1, 8, 1024>}]} {
    %c0 = arith.constant 0 : index
    %c0_0 = arith.constant 0 : index
    %c0_1 = arith.constant 0 : index
    %c0_2 = arith.constant 0 : index
    %0 = vector.load %arg2[%c0, %c0_0, %c0_1, %c0_2] : memref<1x1x32x1152xf32, #tpu.memory_space<vmem>>, vector<1x1x32x1152xf32>
    %1 = vector.shape_cast %0 : vector<1x1x32x1152xf32> to vector<32x1152xf32>
    %c0_3 = arith.constant 0 : index
    %c0_4 = arith.constant 0 : index
    %2 = vector.load %arg3[%c0_3, %c0_4] : memref<72x32xf32, #tpu.memory_space<vmem>>, vector<72x32xf32>
    %cst = arith.constant dense<0.000000e+00> : vector<72x1152xf32>
    %3 = tpu.matmul %2, %1, %cst {dimension_numbers = #tpu.dot_dimension_numbers<[1], [0], [0], [1], [0, 0, 1, 1], [], []>} : vector<72x32xf32>, vector<32x1152xf32>, vector<72x1152xf32> -> vector<72x1152xf32>
    %4 = vector.extract_strided_slice %3 {offsets = [0, 0], sizes = [8, 1024], strides = [1, 1]} : vector<72x1152xf32> to vector<8x1024xf32>
    %5 = vector.extract_strided_slice %3 {offsets = [8, 1], sizes = [8, 1024], strides = [1, 1]} : vector<72x1152xf32> to vector<8x1024xf32>
    %6 = arith.addf %4, %5 : vector<8x1024xf32>
    %7 = vector.extract_strided_slice %3 {offsets = [16, 2], sizes = [8, 1024], strides = [1, 1]} : vector<72x1152xf32> to vector<8x1024xf32>
    %8 = arith.addf %6, %7 : vector<8x1024xf32>
    %9 = vector.extract_strided_slice %3 {offsets = [24, 12], sizes = [8, 1024], strides = [1, 1]} : vector<72x1152xf32> to vector<8x1024xf32>
    %10 = arith.addf %8, %9 : vector<8x1024xf32>
    %11 = vector.extract_strided_slice %3 {offsets = [32, 13], sizes = [8, 1024], strides = [1, 1]} : vector<72x1152xf32> to vector<8x1024xf32>
    %12 = arith.addf %10, %11 : vector<8x1024xf32>
    %13 = vector.extract_strided_slice %3 {offsets = [40, 14], sizes = [8, 1024], strides = [1, 1]} : vector<72x1152xf32> to vector<8x1024xf32>
    %14 = arith.addf %12, %13 : vector<8x1024xf32>
    %15 = vector.extract_strided_slice %3 {offsets = [48, 24], sizes = [8, 1024], strides = [1, 1]} : vector<72x1152xf32> to vector<8x1024xf32>
    %16 = arith.addf %14, %15 : vector<8x1024xf32>
    %17 = vector.extract_strided_slice %3 {offsets = [56, 25], sizes = [8, 1024], strides = [1, 1]} : vector<72x1152xf32> to vector<8x1024xf32>
    %18 = arith.addf %16, %17 : vector<8x1024xf32>
    %19 = vector.extract_strided_slice %3 {offsets = [64, 26], sizes = [8, 1024], strides = [1, 1]} : vector<72x1152xf32> to vector<8x1024xf32>
    %20 = arith.addf %18, %19 : vector<8x1024xf32>
    %cst_5 = arith.constant 0.000000e+00 : f32
    %21 = vector.broadcast %cst_5 : f32 to vector<8x1024xf32>
    %22 = arith.maximumf %20, %21 : vector<8x1024xf32>
    %c0_6 = arith.constant 0 : index
    %c0_7 = arith.constant 0 : index
    %c0_8 = arith.constant 0 : index
    %c0_9 = arith.constant 0 : index
    %23 = vector.load %arg4[%c0_6, %c0_7, %c0_8, %c0_9] : memref<1x1x8x1024xf32, #tpu.memory_space<vmem>>, vector<1x1x8x1024xf32>
    %24 = vector.shape_cast %23 : vector<1x1x8x1024xf32> to vector<8x1024xf32>
    %25 = vector.shape_cast %22 : vector<8x1024xf32> to vector<1x1x8x1024xf32>
    tpu.vector_store %arg4[%c0_6, %c0_7, %c0_8, %c0_9], %25 {strides = array<i32>} : memref<1x1x8x1024xf32, #tpu.memory_space<vmem>>, vector<1x1x8x1024xf32>,
    return
  }
  func.func @transform_0(%arg0: i32, %arg1: i32) -> (i32, i32, i32, i32) {
    %c0_i32 = arith.constant 0 : i32
    %c0_i32_0 = arith.constant 0 : i32
    %c0_i32_1 = arith.constant 0 : i32
    return %arg0, %arg1, %c0_i32, %c0_i32_0 : i32, i32, i32, i32
  }
  func.func @transform_1(%arg0: i32, %arg1: i32) -> (i32, i32) {
    %c0_i32 = arith.constant 0 : i32
    %c0_i32_0 = arith.constant 0 : i32
    %c0_i32_1 = arith.constant 0 : i32
    return %c0_i32, %c0_i32_0 : i32, i32
  }
  func.func @transform_2(%arg0: i32, %arg1: i32) -> (i32, i32, i32, i32) {
    %c0_i32 = arith.constant 0 : i32
    %c0_i32_0 = arith.constant 0 : i32
    %c0_i32_1 = arith.constant 0 : i32
    return %arg0, %arg1, %c0_i32, %c0_i32_0 : i32, i32, i32, i32
  }
}

</mosaic_0001>

<bundles_post_ra>
// kernel: basic_block_3d.2
= control target key start
LH: loop header
LB: loop body
LE: loop exit
PB: predicated region body
PF: predicated region fallthrough
CT: control target
= control target key end

     0   :  { %s868_s9 = smov 0   ;;  %s870_s10 = smov 0   ;;  %s997_s0 = inlined_call_operand.vmem [shape: f32[2,1,64,640], index: 0, kind: input, shape index: {}]   ;;  %s998_s1 = inlined_call_operand.vmem [shape: f32[32,64], index: 1, kind: input, shape index: {}]   ;;  %s999_s2 = inlined_call_operand.vmem [shape: f32[2,1,8,512], index: 2, kind: output, shape index: {}]  }
   0x1   :  { %s872_s11 = smov 0  }
   0x2 LB: > { %s24_s12 = sadd.s32 1, %s843_s10  ;;  %p687_p0 = scmp.ge.s32.totalorder %s847_s11, 1  ;;  %s847_s11 = sphi %s872_s11, %s12_s11   ;;  %s843_s10 = sphi %s870_s10, %s1001_s10   ;;  %s839_s9 = sphi %s868_s9, %s1000_s9  }
   0x3   : > { %p26_p1 = scmp.ge.s32.totalorder %s24_s12, 2  ;;  %p132_p2 = scmp.lt.s32.totalorder %s847_s11, 3 }
   0x5   : > { %s1003_s12 = smov (%p26_p1, %s24_s12), 0  ;;  %p133_p3 = pnand %p687_p0, %p132_p2 }
   0x6   : > { %p162_p4 = scmp.lt.s32.totalorder (!%p133_p3), %s839_s9, 1  ;;  %v849_v0 = vmov (!%p133_p3), 0.0   ;;  %v220_v54 = vld [vmem:[%s998_s1] sm:$0xff] (!%p133_p3)  ;;  %vm224_vm0 = vcmask (!%p133_p3), 523264   ;;  %v221_v58 = vld [vmem:[%s998_s1 + $0x8] sm:$0xff] (!%p133_p3)  ;;  %v222_v62 = vld [vmem:[%s998_s1 + $0x10] sm:$0xff] (!%p133_p3) }
   0x7   : > { %136 = sbr.rel (%p133_p3) target bundleno = 403 (0x193), region = 28  ;;  %301 = vmatprep.mubr.f32.mxu0 (!%p133_p3), %v849_v0  ;;  %390 = vmatprep.mubr.f32.mxu1 (!%p133_p3), %v849_v0  ;;  %s850_s25 = smov (!%p133_p3), 127   ;;  %vm514_vm1 = vcmask (!%p133_p3), 1039360   ;;  %vm542_vm2 = vcmask (!%p133_p3), 957440   ;;  %vm570_vm3 = vcmask (!%p133_p3), 949248  }
   0x8   : > { %s851_s26 = smov (!%p133_p3), 117   ;;  %s852_s27 = smov (!%p133_p3), 116  }
   0xe   : > { %s1005_s9 = smov (!%p162_p4, %s839_s9), 1 }
   0xf   : > { %s796_s13 = smul.u32 320, %s1005_s9  ;;  %s705_s28 = sshll.u32 %s1005_s9, 5 }
  0x10   : > { %s179_s3 = scalar_lea.vmem %s999_s2, %s705_s28 }
  0x11   : > { %s894_s16 = scalar_lea.vmem %s997_s0, %s796_s13 }
  0x12   : > { %v181_v1 = vld [vmem:[%s894_s16 + $0x8] sm:$0xff]  ;;  %v186_v2 = vld [vmem:[%s894_s16 + $0x30] sm:$0xff]  ;;  %v183_v3 = vld [vmem:[%s894_s16 + $0x18] sm:$0xff] }
  0x13   : > { %v740_v4 = vpack.c.bf16 %v186_v2, %v181_v1  ;;  %v188_v5 = vld [vmem:[%s894_s16 + $0x40] sm:$0xff]  ;;  %v185_v7 = vld [vmem:[%s894_s16 + $0x28] sm:$0xff]  ;;  %v182_v10 = vld [vmem:[%s894_s16 + $0x10] sm:$0xff] }
  0x14   : > { %v180_v6 = vld [vmem:[%s894_s16] sm:$0xff]  ;;  %v756_v8 = vpack.c.bf16 %v188_v5, %v183_v3  ;;  %v187_v11 = vld [vmem:[%s894_s16 + $0x38] sm:$0xff]  ;;  %v193_v15 = vld [vmem:[%s894_s16 + $0x68] sm:$0xff] }
  0x15   : > { %v742_v9 = vpack.c.bf16 %v185_v7, %v180_v6  ;;  %v191_v12 = vld [vmem:[%s894_s16 + $0x58] sm:$0xff]  ;;  %741 = vmatprep.subr.bf16.mxu0 %v740_v4  ;;  %v758_v13 = vpack.c.bf16 %v187_v11, %v182_v10  ;;  %v196_v14 = vld [vmem:[%s894_s16 + $0x80] sm:$0xff]  ;;  %v198_v16 = vld [vmem:[%s894_s16 + $0x90] sm:$0xff] }
  0x16   : > { %757 = vmatprep.subr.bf16.mxu1 %v756_v8  ;;  %v744_v17 = vpack.c.bf16 %v196_v14, %v191_v12  ;;  %v760_v18 = vpack.c.bf16 %v198_v16, %v193_v15  ;;  %v190_v19 = vld [vmem:[%s894_s16 + $0x50] sm:$0xff]  ;;  %v195_v20 = vld [vmem:[%s894_s16 + $0x78] sm:$0xff]  ;;  %v192_v21 = vld [vmem:[%s894_s16 + $0x60] sm:$0xff] }
  0x17   : > { %743 = vmatpush1.bf16.msra.mxu0 %v742_v9  ;;  %759 = vmatpush1.bf16.msra.mxu1 %v758_v13  ;;  %v746_v22 = vpack.c.bf16 %v195_v20, %v190_v19  ;;  %v197_v23 = vld [vmem:[%s894_s16 + $0x88] sm:$0xff]  ;;  %v206_v25 = vld [vmem:[%s894_s16 + $0xd0] sm:$0xff]  ;;  %v203_v28 = vld [vmem:[%s894_s16 + $0xb8] sm:$0xff] }
  0x18   : > { %v201_v24 = vld [vmem:[%s894_s16 + $0xa8] sm:$0xff]  ;;  %745 = vmatprep.subr.bf16.mxu0 %v744_v17  ;;  %761 = vmatprep.subr.bf16.mxu1 %v760_v18  ;;  %v762_v26 = vpack.c.bf16 %v197_v23, %v192_v21  ;;  %v208_v29 = vld [vmem:[%s894_s16 + $0xe0] sm:$0xff]  ;;  %v202_v33 = vld [vmem:[%s894_s16 + $0xb0] sm:$0xff] }
  0x19   : > { %v748_v27 = vpack.c.bf16 %v206_v25, %v201_v24  ;;  %v200_v30 = vld [vmem:[%s894_s16 + $0xa0] sm:$0xff]  ;;  %v764_v31 = vpack.c.bf16 %v208_v29, %v203_v28  ;;  %v205_v32 = vld [vmem:[%s894_s16 + $0xc8] sm:$0xff]  ;;  %v207_v34 = vld [vmem:[%s894_s16 + $0xd8] sm:$0xff] }
  0x1a   : > { %v750_v35 = vpack.c.bf16 %v205_v32, %v200_v30  ;;  %v211_v36 = vld [vmem:[%s894_s16 + $0xf8] sm:$0xff]  ;;  %v216_v37 = vld [vmem:[%s894_s16 + $0x120] sm:$0xff]  ;;  %v213_v38 = vld [vmem:[%s894_s16 + $0x108] sm:$0xff]  ;;  %v766_v39 = vpack.c.bf16 %v207_v34, %v202_v33 }
  0x1b   : > { %747 = vmatpush1.bf16.msra.mxu0 %v746_v22  ;;  %763 = vmatpush1.bf16.msra.mxu1 %v762_v26  ;;  %v752_v40 = vpack.c.bf16 %v216_v37, %v211_v36  ;;  %v218_v41 = vld [vmem:[%s894_s16 + $0x130] sm:$0xff]  ;;  %v215_v43 = vld [vmem:[%s894_s16 + $0x118] sm:$0xff]  ;;  %v212_v45 = vld [vmem:[%s894_s16 + $0x100] sm:$0xff] }
  0x1c   : > { %749 = vmatprep.subr.bf16.mxu0 %v748_v27  ;;  %v210_v42 = vld [vmem:[%s894_s16 + $0xf0] sm:$0xff]  ;;  %765 = vmatprep.subr.bf16.mxu1 %v764_v31  ;;  %v768_v44 = vpack.c.bf16 %v218_v41, %v213_v38  ;;  %v217_v46 = vld [vmem:[%s894_s16 + $0x128] sm:$0xff]  ;;  %v184_v47 = vld [vmem:[%s894_s16 + $0x20] sm:$0xff] }
  0x1d   : > { %v189_v48 = vld [vmem:[%s894_s16 + $0x48] sm:$0xff]  ;;  %v754_v49 = vpack.c.bf16 %v215_v43, %v210_v42  ;;  %v770_v50 = vpack.c.bf16 %v217_v46, %v212_v45  ;;  %v194_v52 = vld [vmem:[%s894_s16 + $0x70] sm:$0xff]  ;;  %v199_v53 = vld [vmem:[%s894_s16 + $0x98] sm:$0xff] }
  0x1e   : > { %v772_v51 = vpack.c.bf16 %v189_v48, %v184_v47  ;;  %v776_v55 = vpack.c.bf16 %v199_v53, %v194_v52  ;;  %v204_v56 = vld [vmem:[%s894_s16 + $0xc0] sm:$0xff]  ;;  %v209_v57 = vld [vmem:[%s894_s16 + $0xe8] sm:$0xff]  ;;  %v214_v60 = vld [vmem:[%s894_s16 + $0x110] sm:$0xff] }
  0x1f   : > { %751 = vmatpush1.bf16.msra.mxu0 %v750_v35  ;;  %767 = vmatpush1.bf16.msra.mxu1 %v766_v39  ;;  %v780_v59 = vpack.c.bf16 %v209_v57, %v204_v56  ;;  %v219_v61 = vld [vmem:[%s894_s16 + $0x138] sm:$0xff] }
  0x20   : > { %753 = vmatprep.subr.bf16.mxu0 %v752_v40  ;;  %769 = vmatprep.subr.bf16.mxu1 %v768_v44  ;;  %v784_v63 = vpack.c.bf16 %v219_v61, %v214_v60  ;;  %v223_v1 = vld [vmem:[%s998_s1 + $0x18] sm:$0xff] }
  0x23   : > { %755 = vmatpush1.bf16.msra.mxu0 %v754_v49  ;;  %771 = vmatpush1.bf16.msra.mxu1 %v770_v50 }
  0x24   : > { %773 = vmatprep.subr.bf16.mxu0 %v772_v51  ;;  %788 = vmatprep.subr.bf16.mxu1 %v772_v51 }
  0x26   : > { %691 = vmatmul.mubr.msk.f32.vlgmr.msra.gmra.mrb[0].mxu0 %vm224_vm0, %v220_v54  ;;  %695 = vmatmul.mubr.msk.f32.vlgmr.msra.gmra.mrb[0].mxu1 %vm224_vm0, %v220_v54 }
  0x27   : > { %307 = vmatprep.mubr.f32.mxu0 %v849_v0  ;;  %396 = vmatprep.mubr.f32.mxu1 %v849_v0 }
  0x28   : > { %792 = vmatpush3.bf16.msra.mxu1 %v772_v51  ;;  %775 = vmatpush3.bf16.msra.mxu0 %v772_v51 }
  0x29   : > { %789 = vmatprep.subr.bf16.mxu1 %v776_v55  ;;  %777 = vmatprep.subr.bf16.mxu0 %v776_v55 }
  0x2a   : > { %692 = vmatmul.mubr.msk.f32.gmra.mrb[2].mxu0 %vm224_vm0, %v221_v58  ;;  %696 = vmatmul.mubr.msk.f32.gmra.mrb[2].mxu1 %vm224_vm0, %v221_v58 }
  0x2b   : > { %313 = vmatprep.mubr.f32.mxu0 %v849_v0  ;;  %402 = vmatprep.mubr.f32.mxu1 %v849_v0 }
  0x2c   : > { %793 = vmatpush3.bf16.msra.mxu1 %v776_v55  ;;  %779 = vmatpush3.bf16.msra.mxu0 %v776_v55 }
  0x2d   : > { %790 = vmatprep.subr.bf16.mxu1 %v780_v59  ;;  %781 = vmatprep.subr.bf16.mxu0 %v780_v59 }
  0x2e   : > { %693 = vmatmul.mubr.msk.f32.gmra.mrb[4].mxu0 %vm224_vm0, %v222_v62  ;;  %697 = vmatmul.mubr.msk.f32.gmra.mrb[4].mxu1 %vm224_vm0, %v222_v62 }
  0x2f   : > { %319 = vmatprep.mubr.f32.mxu0 %v849_v0  ;;  %408 = vmatprep.mubr.f32.mxu1 %v849_v0 }
  0x30   : > { %794 = vmatpush3.bf16.msra.mxu1 %v780_v59  ;;  %783 = vmatpush3.bf16.msra.mxu0 %v780_v59 }
  0x31   : > { %791 = vmatprep.subr.bf16.mxu1 %v784_v63  ;;  %785 = vmatprep.subr.bf16.mxu0 %v784_v63 }
  0x32   : > { %694 = vmatmul.mubr.msk.f32.gmra.mrb[6].mxu0 %vm224_vm0, %v223_v1  ;;  %698 = vmatmul.mubr.msk.f32.gmra.mrb[6].mxu1 %vm224_vm0, %v223_v1 }
  0x33   : > { %734 = vmatprep.mubr.msk.f32.mxu0 %vm224_vm0, %v220_v54  ;;  %737 = vmatprep.mubr.msk.f32.mxu1 %vm224_vm0, %v222_v62 }
  0x34   : > { %795 = vmatpush3.bf16.msra.mxu1 %v784_v63  ;;  %787 = vmatpush3.bf16.msra.mxu0 %v784_v63 }
  0x37   : > { %738 = vmatmul.mubr.msk.f32.vlgmr.msra.gmra.mrb[8].mxu1 %vm224_vm0, %v223_v1  ;;  %735 = vmatmul.mubr.msk.f32.vlgmr.msra.gmra.mrb[8].mxu0 %vm224_vm0, %v221_v58 }
  0xf9   : > { %v303_v2 = vpop.f32.mrb[0].mxu0  ;;  %v966_v0 = vpop.f32.mrb[0].mxu1 }
  0xfa   : > { %v305_v3 = vpop.f32.mrb[1].mxu0  ;;  %v968_v4 = vpop.f32.mrb[1].mxu1 }
  0xfd   : > { %v309_v5 = vpop.f32.mrb[2].mxu0  ;;  %v398_v6 = vpop.f32.mrb[2].mxu1 }
  0xfe   : > { %504 = vrot.lane.b32.xlu0 %v309_v5, %s850_s25  ;;  %v311_v7 = vpop.f32.mrb[3].mxu0  ;;  %508 = vrot.lane.b32.xlu1 %v398_v6, %s850_s25  ;;  %v400_v8 = vpop.f32.mrb[3].mxu1 }
 0x101   : > { %v315_v9 = vpop.f32.mrb[4].mxu0  ;;  %v404_v11 = vpop.f32.mrb[4].mxu1 }
 0x102   : > { %506 = vrot.lane.b32.xlu0 %v311_v7, %s850_s25  ;;  %v317_v10 = vpop.f32.mrb[5].mxu0  ;;  %510 = vrot.lane.b32.xlu1 %v400_v8, %s850_s25  ;;  %v406_v12 = vpop.f32.mrb[5].mxu1 }
 0x105   : > { %v321_v13 = vpop.f32.mrb[6].mxu0  ;;  %v410_v15 = vpop.f32.mrb[6].mxu1 }
 0x106   : > { %534 = vrot.lane.b32.xlu0 %v317_v10, %s851_s26  ;;  %v323_v14 = vpop.f32.mrb[7].mxu0  ;;  %532 = vrot.lane.b32.xlu1 %v315_v9, %s851_s26  ;;  %v412_v16 = vpop.f32.mrb[7].mxu1 }
 0x10a   : > { %538 = vrot.lane.b32.xlu0 %v406_v12, %s851_s26  ;;  %v739_v17 = vpop.f32.mrb[8].mxu1  ;;  %536 = vrot.lane.b32.xlu1 %v404_v11, %s851_s26  ;;  %v736_v19 = vpop.f32.mrb[8].mxu0 }
 0x10b   : > { %v490_v18 = vpop.f32.mrb[9].mxu1  ;;  %v481_v20 = vpop.f32.mrb[9].mxu0 }
 0x10e   : > { %560 = vrot.lane.b32.xlu0 %v321_v13, %s852_s27  ;;  %562 = vrot.lane.b32.xlu1 %v323_v14, %s852_s27 }
 0x112   : > { %564 = vrot.lane.b32.xlu0 %v410_v15, %s852_s27  ;;  %540 = vrot.lane.b32.xlu1 %v490_v18, %s851_s26 }
 0x116   : > { %512 = vrot.lane.b32.xlu0 %v736_v19, %s850_s25  ;;  %566 = vrot.lane.b32.xlu1 %v412_v16, %s852_s27 }
 0x11a   : > { %568 = vrot.lane.b32.xlu0 %v739_v17, %s852_s27 }
 0x170   : > { %v505_v21 = vpop.permute.xlu0 %504  ;;  %v509_v22 = vpop.permute.xlu1 %508 }
 0x174   : > { %v507_v23 = vpop.permute.xlu0 %506  ;;  %v511_v24 = vpop.permute.xlu1 %510 }
 0x175   : > { %v515_v27 = vsel %vm514_vm1, %v505_v21, %v507_v23  ;;  %v516_v31 = vsel %vm514_vm1, %v507_v23, %v509_v22  ;;  %v517_v40 = vsel %vm514_vm1, %v509_v22, %v511_v24 }
 0x176   : > { %v523_v32 = vadd.f32 %v515_v27, %v303_v2  ;;  %v524_v37 = vadd.f32 %v516_v31, %v305_v3  ;;  %v525_v48 = vadd.f32 %v517_v40, %v966_v0 }
 0x178   : > { %v535_v25 = vpop.permute.xlu0 %534  ;;  %v533_v26 = vpop.permute.xlu1 %532 }
 0x179   : > { %v543_v30 = vsel %vm542_vm2, %v533_v26, %v535_v25 }
 0x17a   : > { %v551_v34 = vadd.f32 %v543_v30, %v523_v32 }
 0x17c   : > { %v539_v28 = vpop.permute.xlu0 %538  ;;  %v537_v29 = vpop.permute.xlu1 %536 }
 0x17d   : > { %v544_v35 = vsel %vm542_vm2, %v535_v25, %v537_v29  ;;  %v545_v46 = vsel %vm542_vm2, %v537_v29, %v539_v28 }
 0x17e   : > { %v552_v41 = vadd.f32 %v544_v35, %v524_v37  ;;  %v553_v51 = vadd.f32 %v545_v46, %v525_v48 }
 0x180   : > { %v561_v33 = vpop.permute.xlu0 %560  ;;  %v563_v36 = vpop.permute.xlu1 %562 }
 0x181   : > { %v571_v38 = vsel %vm570_vm3, %v561_v33, %v563_v36 }
 0x182   : > { %v579_v39 = vadd.f32 %v571_v38, %v551_v34 }
 0x184   : > { %v565_v42 = vpop.permute.xlu0 %564  ;;  %v583_v43 = vmax.f32 %v579_v39, 0.0  ;;  %v541_v45 = vpop.permute.xlu1 %540 }
 0x185   : > { %v572_v44 = vsel %vm570_vm3, %v563_v36, %v565_v42  ;;  %v546_v56 = vsel %vm542_vm2, %v539_v28, %v541_v45 }
 0x186   : > { %v580_v47 = vadd.f32 %v572_v44, %v552_v41  ;;  %587 = vst [vmem:[%s179_s3] sm:$0xff] %v583_v43 }
 0x188   : > { %v584_v49 = vmax.f32 %v580_v47, 0.0  ;;  %v513_v50 = vpop.permute.xlu0 %512  ;;  %v567_v52 = vpop.permute.xlu1 %566 }
 0x189   : > { %v518_v53 = vsel %vm514_vm1, %v511_v24, %v513_v50  ;;  %v573_v54 = vsel %vm570_vm3, %v565_v42, %v567_v52 }
 0x18a   : > { %588 = vst [vmem:[%s179_s3 + $0x8] sm:$0xff] %v584_v49  ;;  %v526_v55 = vadd.f32 %v518_v53, %v968_v4  ;;  %v581_v57 = vadd.f32 %v573_v54, %v553_v51 }
 0x18c   : > { %v554_v58 = vadd.f32 %v546_v56, %v526_v55  ;;  %v569_v59 = vpop.permute.xlu0 %568  ;;  %v585_v60 = vmax.f32 %v581_v57, 0.0 }
 0x18d   : > { %v574_v61 = vsel %vm570_vm3, %v567_v52, %v569_v59 }
 0x18e   : > { %v582_v62 = vadd.f32 %v574_v61, %v554_v58  ;;  %589 = vst [vmem:[%s179_s3 + $0x10] sm:$0xff] %v585_v60 }
 0x190   : > { %v586_v63 = vmax.f32 %v582_v62, 0.0 }
 0x192   : > { %590 = vst [vmem:[%s179_s3 + $0x18] sm:$0xff] %v586_v63 }
 0x193 PF: > { %s12_s11 = sadd.s32 1, %s847_s11   ;;  %s1000_s9 = smov %s843_s10 }
 0x194   : > { %p9_p5 = scmp.ge.s32.totalorder %s12_s11, 4   ;;  %s1001_s10 = smov %s1003_s12 }
 0x196   :  { %11 = sbr.rel (!%p9_p5) target bundleno = 2 (0x2), region = 58 }

// kernel: basic_block_3d.3
= control target key start
LH: loop header
LB: loop body
LE: loop exit
PB: predicated region body
PF: predicated region fallthrough
CT: control target
= control target key end

     0   :  { %s1594_s9 = smov 0   ;;  %s1596_s10 = smov 0   ;;  %s2076_s0 = inlined_call_operand.vmem [shape: f32[2,1,32,1152], index: 0, kind: input, shape index: {}]   ;;  %s2077_s1 = inlined_call_operand.vmem [shape: f32[72,32], index: 1, kind: input, shape index: {}]   ;;  %s2078_s2 = inlined_call_operand.vmem [shape: f32[2,1,8,1024], index: 2, kind: output, shape index: {}]  }
   0x1   :  { %s1598_s11 = smov 0  }
   0x2 LB: > { %s24_s12 = sadd.s32 1, %s1562_s10  ;;  %p1366_p0 = scmp.ge.s32.totalorder %s1566_s11, 1  ;;  %s1566_s11 = sphi %s1598_s11, %s12_s11   ;;  %s1562_s10 = sphi %s1596_s10, %s2080_s10   ;;  %s1558_s9 = sphi %s1594_s9, %s2079_s9  }
   0x3   : > { %p26_p1 = scmp.ge.s32.totalorder %s24_s12, 2  ;;  %p132_p2 = scmp.lt.s32.totalorder %s1566_s11, 3 }
   0x5   : > { %s2082_s12 = smov (%p26_p1, %s24_s12), 0  ;;  %p133_p3 = pnand %p1366_p0, %p132_p2 }
   0x6   : > { %p162_p4 = scmp.lt.s32.totalorder (!%p133_p3), %s1558_s9, 1  ;;  %v1568_v0 = vmov (!%p133_p3), 0.0   ;;  %v1645_v27 = vld [vmem:[%s2077_s1] sm:$0xff] (!%p133_p3)  ;;  %vm225_vm0 = vcmask (!%p133_p3), 261120   ;;  %v1650_v28 = vld [vmem:[%s2077_s1 + $0x28] sm:$0xff] (!%p133_p3)  ;;  %v1672_v40 = vld [vmem:[%s2077_s1 + $0x30] sm:$0xff] (!%p133_p3) }
   0x7   : > { %136 = sbr.rel (%p133_p3) target bundleno = 503 (0x1f7), region = 28  ;;  %317 = vmatprep.mubr.f32.mxu0 (!%p133_p3), %v1568_v0  ;;  %347 = vmatprep.mubr.f32.mxu1 (!%p133_p3), %v1568_v0  ;;  %v1667_v39 = vld [vmem:[%s2077_s1 + $0x8] sm:$0xff] (!%p133_p3)  ;;  %v1682_v44 = vld [vmem:[%s2077_s1 + $0x10] sm:$0xff] (!%p133_p3)  ;;  %v1688_v45 = vld [vmem:[%s2077_s1 + $0x38] sm:$0xff] (!%p133_p3)  ;;  %v1569_v46 = vmov (!%p133_p3), 0.0|0.0   ;;  %vm1570_vm1 = vmmov (!%p133_p3), 0  }
   0x8   : > { %v1698_v47 = vld [vmem:[%s2077_s1 + $0x40] sm:$0xff] (!%p133_p3)  ;;  %v1704_v48 = vld [vmem:[%s2077_s1 + $0x18] sm:$0xff] (!%p133_p3)  ;;  %s1571_s7 = smov (!%p133_p3), 114   ;;  %s1572_s8 = smov (!%p133_p3), 127   ;;  %vm865_vm2 = vcmask (!%p133_p3), 1039360   ;;  %vm917_vm3 = vcmask (!%p133_p3), 1031168  }
   0x9   : > { %v1719_v53 = vld [vmem:[%s2077_s1 + $0x20] sm:$0xff] (!%p133_p3)  ;;  %s1574_s14 = smov (!%p133_p3), 126   ;;  %s1575_s15 = smov (!%p133_p3), 103   ;;  %vm969_vm4 = vcmask (!%p133_p3), 949248   ;;  %vm1021_vm5 = vcmask (!%p133_p3), 941056   ;;  %vm1073_vm6 = vcmask (!%p133_p3), 932864  }
   0xa   : > { %s1577_s17 = smov (!%p133_p3), 116   ;;  %s1578_s18 = smov (!%p133_p3), 115   ;;  %vm1125_vm7 = vcmask (!%p133_p3), 850944   ;;  %vm1177_vm8 = vcmask (!%p133_p3), 842752   ;;  %vm1229_vm9 = vcmask (!%p133_p3), 834560  }
   0xe   : > { %s2084_s9 = smov (!%p162_p4, %s1558_s9), 1 }
   0xf   : > { %s1508_s13 = smul.u32 288, %s2084_s9  ;;  %s1417_s19 = sshll.u32 %s2084_s9, 6 }
  0x10   : > { %s1960_s22 = scalar_lea.vmem %s2078_s2, %s1417_s19 }
  0x11   : > { %s1620_s16 = scalar_lea.vmem %s2076_s0, %s1508_s13  ;;  %s1573_s13 = smov 104  }
  0x12   : > { %v181_v1 = vld [vmem:[%s1620_s16 + $0x8] sm:$0xff]  ;;  %v190_v2 = vld [vmem:[%s1620_s16 + $0x50] sm:$0xff]  ;;  %v180_v3 = vld [vmem:[%s1620_s16] sm:$0xff] }
  0x13   : > { %v1466_v4 = vpack.c.bf16 %v190_v2, %v181_v1  ;;  %v189_v5 = vld [vmem:[%s1620_s16 + $0x48] sm:$0xff]  ;;  %v199_v6 = vld [vmem:[%s1620_s16 + $0x98] sm:$0xff]  ;;  %v208_v7 = vld [vmem:[%s1620_s16 + $0xe0] sm:$0xff] }
  0x14   : > { %v1468_v8 = vpack.c.bf16 %v189_v5, %v180_v3  ;;  %v1470_v9 = vpack.c.bf16 %v208_v7, %v199_v6  ;;  %v198_v10 = vld [vmem:[%s1620_s16 + $0x90] sm:$0xff]  ;;  %v207_v11 = vld [vmem:[%s1620_s16 + $0xd8] sm:$0xff]  ;;  %v192_v13 = vld [vmem:[%s1620_s16 + $0x60] sm:$0xff] }
  0x15   : > { %v183_v12 = vld [vmem:[%s1620_s16 + $0x18] sm:$0xff]  ;;  %1467 = vmatprep.subr.bf16.mxu0 %v1466_v4  ;;  %1504 = vmatprep.subr.bf16.mxu1 %v1466_v4  ;;  %v1472_v14 = vpack.c.bf16 %v207_v11, %v198_v10  ;;  %v185_v15 = vld [vmem:[%s1620_s16 + $0x28] sm:$0xff]  ;;  %v194_v16 = vld [vmem:[%s1620_s16 + $0x70] sm:$0xff] }
  0x16   : > { %1469 = vmatpush1.bf16.msra.mxu0 %v1468_v8  ;;  %1506 = vmatpush1.bf16.msra.mxu1 %v1468_v8  ;;  %v1474_v17 = vpack.c.bf16 %v192_v13, %v183_v12  ;;  %v182_v18 = vld [vmem:[%s1620_s16 + $0x10] sm:$0xff]  ;;  %v191_v19 = vld [vmem:[%s1620_s16 + $0x58] sm:$0xff]  ;;  %v1482_v20 = vpack.c.bf16 %v194_v16, %v185_v15  ;;  %v184_v21 = vld [vmem:[%s1620_s16 + $0x20] sm:$0xff] }
  0x17   : > { %1471 = vmatprep.subr.bf16.mxu0 %v1470_v9  ;;  %1505 = vmatprep.subr.bf16.mxu1 %v1470_v9  ;;  %v193_v22 = vld [vmem:[%s1620_s16 + $0x68] sm:$0xff]  ;;  %v210_v24 = vld [vmem:[%s1620_s16 + $0xf0] sm:$0xff]  ;;  %v203_v25 = vld [vmem:[%s1620_s16 + $0xb8] sm:$0xff]  ;;  %v1476_v29 = vpack.c.bf16 %v191_v19, %v182_v18 }
  0x18   : > { %v201_v23 = vld [vmem:[%s1620_s16 + $0xa8] sm:$0xff]  ;;  %v212_v26 = vld [vmem:[%s1620_s16 + $0x100] sm:$0xff]  ;;  %v1484_v30 = vpack.c.bf16 %v193_v22, %v184_v21  ;;  %v202_v35 = vld [vmem:[%s1620_s16 + $0xb0] sm:$0xff] }
  0x19   : > { %v200_v31 = vld [vmem:[%s1620_s16 + $0xa0] sm:$0xff]  ;;  %v1478_v32 = vpack.c.bf16 %v210_v24, %v201_v23  ;;  %v209_v33 = vld [vmem:[%s1620_s16 + $0xe8] sm:$0xff]  ;;  %v1486_v34 = vpack.c.bf16 %v212_v26, %v203_v25  ;;  %v211_v36 = vld [vmem:[%s1620_s16 + $0xf8] sm:$0xff] }
  0x1a   : > { %1473 = vmatpush1.bf16.msra.mxu0 %v1472_v14  ;;  %1507 = vmatpush1.bf16.msra.mxu1 %v1472_v14  ;;  %v187_v37 = vld [vmem:[%s1620_s16 + $0x38] sm:$0xff]  ;;  %v196_v38 = vld [vmem:[%s1620_s16 + $0x80] sm:$0xff]  ;;  %v1480_v41 = vpack.c.bf16 %v209_v33, %v200_v31  ;;  %v1488_v42 = vpack.c.bf16 %v211_v36, %v202_v35  ;;  %v186_v49 = vld [vmem:[%s1620_s16 + $0x30] sm:$0xff] }
  0x1b   : > { %1475 = vmatprep.subr.bf16.mxu1 %v1474_v17  ;;  %1483 = vmatprep.subr.bf16.mxu0 %v1482_v20  ;;  %v1490_v43 = vpack.c.bf16 %v196_v38, %v187_v37  ;;  %v195_v50 = vld [vmem:[%s1620_s16 + $0x78] sm:$0xff]  ;;  %v205_v51 = vld [vmem:[%s1620_s16 + $0xc8] sm:$0xff]  ;;  %v214_v52 = vld [vmem:[%s1620_s16 + $0x110] sm:$0xff] }
  0x1c   : > { %v1492_v54 = vpack.c.bf16 %v195_v50, %v186_v49  ;;  %v188_v55 = vld [vmem:[%s1620_s16 + $0x40] sm:$0xff]  ;;  %v197_v56 = vld [vmem:[%s1620_s16 + $0x88] sm:$0xff]  ;;  %v1494_v57 = vpack.c.bf16 %v214_v52, %v205_v51  ;;  %v206_v62 = vld [vmem:[%s1620_s16 + $0xd0] sm:$0xff] }
  0x1d   : > { %1370 = vmatmul.mubr.msk.f32.vlgmr.msra.gmra.mrb[0].mxu0 %vm225_vm0, %v1645_v27  ;;  %1375 = vmatmul.mubr.msk.f32.vlgmr.msra.gmra.mrb[0].mxu1 %vm225_vm0, %v1650_v28  ;;  %v204_v58 = vld [vmem:[%s1620_s16 + $0xc0] sm:$0xff]  ;;  %v213_v59 = vld [vmem:[%s1620_s16 + $0x108] sm:$0xff]  ;;  %v1499_v60 = vpack.c.bf16 %v197_v56, %v188_v55  ;;  %v215_v63 = vld [vmem:[%s1620_s16 + $0x118] sm:$0xff]  ;;  %s1576_s16 = smov 102  }
  0x1e   : > { %323 = vmatprep.mubr.f32.mxu0 %v1568_v0  ;;  %353 = vmatprep.mubr.f32.mxu1 %v1568_v0  ;;  %v1496_v61 = vpack.c.bf16 %v213_v59, %v204_v58  ;;  %v1502_v1 = vpack.c.bf16 %v215_v63, %v206_v62 }
  0x1f   : > { %1477 = vmatpush1.bf16.msra.mxu1 %v1476_v29  ;;  %1485 = vmatpush1.bf16.msra.mxu0 %v1484_v30 }
  0x20   : > { %1479 = vmatprep.subr.bf16.mxu1 %v1478_v32  ;;  %1487 = vmatprep.subr.bf16.mxu0 %v1486_v34 }
  0x21   : > { %1371 = vmatmul.mubr.msk.f32.gmra.mrb[2].mxu0 %vm225_vm0, %v1667_v39  ;;  %1376 = vmatmul.mubr.msk.f32.gmra.mrb[2].mxu1 %vm225_vm0, %v1672_v40 }
  0x22   : > { %329 = vmatprep.mubr.f32.mxu0 %v1568_v0  ;;  %359 = vmatprep.mubr.f32.mxu1 %v1568_v0 }
  0x23   : > { %1481 = vmatpush1.bf16.msra.mxu1 %v1480_v41  ;;  %1489 = vmatpush1.bf16.msra.mxu0 %v1488_v42 }
  0x24   : > { %1491 = vmatprep.subr.bf16.mxu1 %v1490_v43  ;;  %1498 = vmatprep.subr.bf16.mxu0 %v1569_v46 }
  0x25   : > { %1372 = vmatmul.mubr.msk.f32.gmra.mrb[4].mxu0 %vm225_vm0, %v1682_v44  ;;  %1377 = vmatmul.mubr.msk.f32.gmra.mrb[4].mxu1 %vm225_vm0, %v1688_v45 }
  0x26   : > { %365 = vmatprep.mubr.f32.mxu1 %v1568_v0  ;;  %335 = vmatprep.mubr.f32.mxu0 %v1568_v0 }
  0x29   : > { %1378 = vmatmul.mubr.msk.f32.gmra.mrb[6].mxu1 %vm225_vm0, %v1698_v47  ;;  %1373 = vmatmul.mubr.msk.f32.gmra.mrb[6].mxu0 %vm225_vm0, %v1704_v48 }
  0x2a   : > { %341 = vmatprep.mubr.f32.mxu0 %v1568_v0  ;;  %436 = vmatprep.mubr.f32.mxu1 %v1568_v0 }
  0x2d   : > { %1374 = vmatmul.mubr.msk.f32.gmra.mrb[8].mxu0 %vm225_vm0, %v1719_v53  ;;  %1379 = vmatmul.mubr.msk.f32.vlgmr.msra.gmra.mrb[8].mxu1 %vm225_vm0, %v1645_v27 }
  0x2e   : > { %442 = vmatprep.mubr.f32.mxu1 %v1568_v0  ;;  %555 = vmatprep.mubr.f32.mxu0 %v1568_v0 }
  0x2f   : > { %1493 = vmatpush1.bf16.msra.mxu1 %v1492_v54 }
  0x30   : > { %1495 = vmatprep.subr.bf16.mxu1 %v1494_v57 }
  0x31   : > { %1380 = vmatmul.mubr.msk.f32.gmra.mrb[10].mxu1 %vm225_vm0, %v1667_v39  ;;  %1388 = vmatmul.mubr.msk.f32.vlgmr.msra.gmra.mrb[10].mxu0 %vm225_vm0, %v1645_v27 }
  0x32   : > { %448 = vmatprep.mubr.f32.mxu1 %v1568_v0  ;;  %561 = vmatprep.mubr.f32.mxu0 %v1568_v0 }
  0x33   : > { %1500 = vmatpush3.bf16.msra.mxu0 %v1499_v60  ;;  %1497 = vmatpush1.bf16.msra.mxu1 %v1496_v61 }
  0x34   : > { %1501 = vmatprep.subr.bf16.mxu0 %v1569_v46 }
  0x35   : > { %1381 = vmatmul.mubr.msk.f32.gmra.mrb[12].mxu1 %vm225_vm0, %v1682_v44  ;;  %1389 = vmatmul.mubr.msk.f32.gmra.mrb[12].mxu0 %vm225_vm0, %v1667_v39 }
  0x36   : > { %454 = vmatprep.mubr.f32.mxu1 %v1568_v0  ;;  %567 = vmatprep.mubr.f32.mxu0 %v1568_v0 }
  0x37   : > { %1503 = vmatpush3.bf16.msra.mxu0 %v1502_v1 }
  0x39   : > { %1382 = vmatmul.mubr.msk.f32.gmra.mrb[14].mxu1 %vm225_vm0, %v1704_v48  ;;  %1390 = vmatmul.mubr.msk.f32.gmra.mrb[14].mxu0 %vm225_vm0, %v1682_v44 }
  0x3a   : > { %460 = vmatprep.mubr.f32.mxu1 %v1568_v0  ;;  %573 = vmatprep.mubr.f32.mxu0 %v1568_v0 }
  0x3d   : > { %1383 = vmatmul.mubr.msk.f32.gmra.mrb[16].mxu1 %vm225_vm0, %v1719_v53  ;;  %1391 = vmatmul.mubr.msk.f32.gmra.mrb[16].mxu0 %vm225_vm0, %v1704_v48 }
  0x3e   : > { %466 = vmatprep.mubr.f32.mxu1 %v1568_v0  ;;  %579 = vmatprep.mubr.f32.mxu0 %v1568_v0 }
  0x41   : > { %1384 = vmatmul.mubr.msk.f32.gmra.mrb[18].mxu1 %vm225_vm0, %v1650_v28  ;;  %1392 = vmatmul.mubr.msk.f32.gmra.mrb[18].mxu0 %vm225_vm0, %v1719_v53 }
  0x42   : > { %472 = vmatprep.mubr.f32.mxu1 %v1568_v0  ;;  %585 = vmatprep.mubr.f32.mxu0 %v1568_v0 }
  0x45   : > { %1385 = vmatmul.mubr.msk.f32.gmra.mrb[20].mxu1 %vm225_vm0, %v1672_v40  ;;  %1393 = vmatmul.mubr.msk.f32.gmra.mrb[20].mxu0 %vm225_vm0, %v1650_v28 }
  0x46   : > { %478 = vmatprep.mubr.f32.mxu1 %v1568_v0  ;;  %591 = vmatprep.mubr.f32.mxu0 %v1568_v0 }
  0x49   : > { %1386 = vmatmul.mubr.msk.f32.gmra.mrb[22].mxu1 %vm225_vm0, %v1688_v45  ;;  %1394 = vmatmul.mubr.msk.f32.gmra.mrb[22].mxu0 %vm225_vm0, %v1672_v40 }
  0x4a   : > { %484 = vmatprep.mubr.f32.mxu1 %v1568_v0  ;;  %597 = vmatprep.mubr.f32.mxu0 %v1568_v0 }
  0x4d   : > { %1387 = vmatmul.mubr.msk.f32.gmra.mrb[24].mxu1 %vm225_vm0, %v1698_v47  ;;  %1395 = vmatmul.mubr.msk.f32.gmra.mrb[24].mxu0 %vm225_vm0, %v1688_v45 }
  0x4e   : > { %603 = vmatprep.mubr.f32.mxu0 %v1568_v0  ;;  %674 = vmatprep.mubr.f32.mxu1 %v1568_v0 }
  0x51   : > { %1396 = vmatmul.mubr.msk.f32.gmra.mrb[26].mxu0 %vm225_vm0, %v1698_v47  ;;  %1397 = vmatmul.mubr.msk.f32.vlgmr.msra.gmra.mrb[26].mxu1 %vm225_vm0, %v1645_v27 }
  0x52   : > { %680 = vmatprep.mubr.f32.mxu1 %v1568_v0  ;;  %1439 = vmatprep.mubr.msk.f32.mxu0 %vm1570_vm1, %v1568_v0 }
  0x55   : > { %1398 = vmatmul.mubr.msk.f32.gmra.mrb[28].mxu1 %vm225_vm0, %v1667_v39  ;;  %1440 = vmatmul.mubr.msk.f32.vlgmr.msra.gmra.mrb[28].mxu0 %vm225_vm0, %v1645_v27 }
  0x56   : > { %686 = vmatprep.mubr.f32.mxu1 %v1568_v0  ;;  %1442 = vmatprep.mubr.msk.f32.mxu0 %vm1570_vm1, %v1568_v0 }
  0x59   : > { %1399 = vmatmul.mubr.msk.f32.gmra.mrb[30].mxu1 %vm225_vm0, %v1682_v44  ;;  %1443 = vmatmul.mubr.msk.f32.gmra.mrb[30].mxu0 %vm225_vm0, %v1667_v39 }
  0x5a   : > { %1445 = vmatprep.mubr.msk.f32.mxu0 %vm1570_vm1, %v1568_v0  ;;  %692 = vmatprep.mubr.f32.mxu1 %v1568_v0 }
  0x5d   : > { %1446 = vmatmul.mubr.msk.f32.gmra.mrb[32].mxu0 %vm225_vm0, %v1682_v44  ;;  %1400 = vmatmul.mubr.msk.f32.gmra.mrb[32].mxu1 %vm225_vm0, %v1704_v48 }
  0x5e   : > { %698 = vmatprep.mubr.f32.mxu1 %v1568_v0  ;;  %1448 = vmatprep.mubr.msk.f32.mxu0 %vm1570_vm1, %v1568_v0 }
  0x61   : > { %1401 = vmatmul.mubr.msk.f32.gmra.mrb[34].mxu1 %vm225_vm0, %v1719_v53  ;;  %1449 = vmatmul.mubr.msk.f32.gmra.mrb[34].mxu0 %vm225_vm0, %v1704_v48 }
  0x62   : > { %1451 = vmatprep.mubr.msk.f32.mxu0 %vm1570_vm1, %v1568_v0  ;;  %704 = vmatprep.mubr.f32.mxu1 %v1568_v0 }
  0x65   : > { %1452 = vmatmul.mubr.msk.f32.gmra.mrb[36].mxu0 %vm225_vm0, %v1719_v53  ;;  %1402 = vmatmul.mubr.msk.f32.gmra.mrb[36].mxu1 %vm225_vm0, %v1650_v28 }
  0x66   : > { %710 = vmatprep.mubr.f32.mxu1 %v1568_v0  ;;  %1454 = vmatprep.mubr.msk.f32.mxu0 %vm1570_vm1, %v1568_v0 }
  0x69   : > { %1403 = vmatmul.mubr.msk.f32.gmra.mrb[38].mxu1 %vm225_vm0, %v1672_v40  ;;  %1455 = vmatmul.mubr.msk.f32.gmra.mrb[38].mxu0 %vm225_vm0, %v1650_v28 }
  0x6a   : > { %1457 = vmatprep.mubr.msk.f32.mxu0 %vm1570_vm1, %v1568_v0  ;;  %716 = vmatprep.mubr.f32.mxu1 %v1568_v0 }
  0x6d   : > { %1458 = vmatmul.mubr.msk.f32.gmra.mrb[40].mxu0 %vm225_vm0, %v1672_v40  ;;  %1404 = vmatmul.mubr.msk.f32.gmra.mrb[40].mxu1 %vm225_vm0, %v1688_v45 }
  0x6e   : > { %722 = vmatprep.mubr.f32.mxu1 %v1568_v0  ;;  %1460 = vmatprep.mubr.msk.f32.mxu0 %vm1570_vm1, %v1568_v0 }
  0x71   : > { %1405 = vmatmul.mubr.msk.f32.gmra.mrb[42].mxu1 %vm225_vm0, %v1698_v47  ;;  %1461 = vmatmul.mubr.msk.f32.gmra.mrb[42].mxu0 %vm225_vm0, %v1688_v45 }
  0x72   : > { %1463 = vmatprep.mubr.msk.f32.mxu0 %vm1570_vm1, %v1568_v0 }
  0x75   : > { %1464 = vmatmul.mubr.msk.f32.gmra.mrb[44].mxu0 %vm225_vm0, %v1698_v47 }
  0xf0   : > { %v1845_v2 = vpop.f32.mrb[0].mxu0  ;;  %v349_v3 = vpop.f32.mrb[0].mxu1 }
  0xf1   : > { %1055 = vrot.lane.b32.xlu0 %v349_v3, %s1571_s7  ;;  %v1848_v4 = vpop.f32.mrb[1].mxu0  ;;  %v351_v5 = vpop.f32.mrb[1].mxu1 }
  0xf2   : > { %1057 = vrot.lane.b32.xlu1 %v351_v5, %s1571_s7 }
  0xf4   : > { %v325_v6 = vpop.f32.mrb[2].mxu0  ;;  %v355_v7 = vpop.f32.mrb[2].mxu1 }
  0xf5   : > { %v357_v8 = vpop.f32.mrb[3].mxu1  ;;  %847 = vrot.lane.b32.xlu0 %v325_v6, %s1572_s8  ;;  %v327_v0 = vpop.f32.mrb[3].mxu0 }
  0xf6   : > { %1107 = vrot.lane.b32.xlu1 %v355_v7, %s1573_s13 }
  0xf8   : > { %v331_v9 = vpop.f32.mrb[4].mxu0  ;;  %v361_v10 = vpop.f32.mrb[4].mxu1 }
  0xf9   : > { %849 = vrot.lane.b32.xlu0 %v327_v0, %s1572_s8  ;;  %v333_v11 = vpop.f32.mrb[5].mxu0  ;;  %v363_v12 = vpop.f32.mrb[5].mxu1 }
  0xfa   : > { %899 = vrot.lane.b32.xlu1 %v331_v9, %s1574_s14 }
  0xfc   : > { %v367_v13 = vpop.f32.mrb[6].mxu1  ;;  %v337_v14 = vpop.f32.mrb[6].mxu0 }
  0xfd   : > { %1109 = vrot.lane.b32.xlu0 %v357_v8, %s1573_s13  ;;  %v369_v15 = vpop.f32.mrb[7].mxu1  ;;  %v339_v16 = vpop.f32.mrb[7].mxu0 }
  0xfe   : > { %1161 = vrot.lane.b32.xlu1 %v363_v12, %s1575_s15 }
 0x100   : > { %v343_v17 = vpop.f32.mrb[8].mxu0  ;;  %v1857_v18 = vpop.f32.mrb[8].mxu1 }
 0x101   : > { %1159 = vrot.lane.b32.xlu0 %v361_v10, %s1575_s15  ;;  %v1860_v19 = vpop.f32.mrb[9].mxu1  ;;  %v345_v20 = vpop.f32.mrb[9].mxu0 }
 0x102   : > { %1211 = vrot.lane.b32.xlu1 %v367_v13, %s1576_s16 }
 0x104   : > { %v444_v21 = vpop.f32.mrb[10].mxu1  ;;  %v1863_v22 = vpop.f32.mrb[10].mxu0 }
 0x105   : > { %901 = vrot.lane.b32.xlu0 %v333_v11, %s1574_s14  ;;  %v446_v23 = vpop.f32.mrb[11].mxu1  ;;  %v1866_v24 = vpop.f32.mrb[11].mxu0 }
 0x106   : > { %953 = vrot.lane.b32.xlu1 %v339_v16, %s1577_s17 }
 0x108   : > { %v450_v25 = vpop.f32.mrb[12].mxu1  ;;  %v563_v26 = vpop.f32.mrb[12].mxu0 }
 0x109   : > { %951 = vrot.lane.b32.xlu0 %v337_v14, %s1577_s17  ;;  %v452_v27 = vpop.f32.mrb[13].mxu1  ;;  %v565_v28 = vpop.f32.mrb[13].mxu0 }
 0x10a   : > { %1003 = vrot.lane.b32.xlu1 %v343_v17, %s1578_s18 }
 0x10c   : > { %v456_v29 = vpop.f32.mrb[14].mxu1  ;;  %v569_v30 = vpop.f32.mrb[14].mxu0 }
 0x10d   : > { %1213 = vrot.lane.b32.xlu0 %v369_v15, %s1576_s16  ;;  %v458_v31 = vpop.f32.mrb[15].mxu1  ;;  %v571_v32 = vpop.f32.mrb[15].mxu0 }
 0x10e   : > { %851 = vrot.lane.b32.xlu1 %v444_v21, %s1572_s8 }
 0x110   : > { %v462_v33 = vpop.f32.mrb[16].mxu1  ;;  %v575_v34 = vpop.f32.mrb[16].mxu0 }
 0x111   : > { %1005 = vrot.lane.b32.xlu0 %v345_v20, %s1578_s18  ;;  %v464_v35 = vpop.f32.mrb[17].mxu1  ;;  %v577_v36 = vpop.f32.mrb[17].mxu0 }
 0x112   : > { %853 = vrot.lane.b32.xlu1 %v446_v23, %s1572_s8 }
 0x114   : > { %v468_v37 = vpop.f32.mrb[18].mxu1  ;;  %v581_v38 = vpop.f32.mrb[18].mxu0 }
 0x115   : > { %855 = vrot.lane.b32.xlu0 %v563_v26, %s1572_s8  ;;  %v470_v39 = vpop.f32.mrb[19].mxu1  ;;  %v583_v40 = vpop.f32.mrb[19].mxu0 }
 0x116   : > { %903 = vrot.lane.b32.xlu1 %v450_v25, %s1574_s14 }
 0x118   : > { %v474_v41 = vpop.f32.mrb[20].mxu1  ;;  %v587_v42 = vpop.f32.mrb[20].mxu0 }
 0x119   : > { %905 = vrot.lane.b32.xlu0 %v452_v27, %s1574_s14  ;;  %v476_v43 = vpop.f32.mrb[21].mxu1  ;;  %v589_v44 = vpop.f32.mrb[21].mxu0 }
 0x11a   : > { %857 = vrot.lane.b32.xlu1 %v565_v28, %s1572_s8 }
 0x11c   : > { %v480_v45 = vpop.f32.mrb[22].mxu1  ;;  %v593_v46 = vpop.f32.mrb[22].mxu0 }
 0x11d   : > { %955 = vrot.lane.b32.xlu0 %v456_v29, %s1577_s17  ;;  %v482_v47 = vpop.f32.mrb[23].mxu1  ;;  %v595_v48 = vpop.f32.mrb[23].mxu0 }
 0x11e   : > { %907 = vrot.lane.b32.xlu1 %v569_v30, %s1574_s14 }
 0x120   : > { %v486_v49 = vpop.f32.mrb[24].mxu1  ;;  %v599_v50 = vpop.f32.mrb[24].mxu0 }
 0x121   : > { %909 = vrot.lane.b32.xlu0 %v571_v32, %s1574_s14  ;;  %v488_v51 = vpop.f32.mrb[25].mxu1  ;;  %v601_v52 = vpop.f32.mrb[25].mxu0 }
 0x122   : > { %957 = vrot.lane.b32.xlu1 %v458_v31, %s1577_s17 }
 0x124   : > { %v605_v53 = vpop.f32.mrb[26].mxu0  ;;  %v1883_v54 = vpop.f32.mrb[26].mxu1 }
 0x125   : > { %959 = vrot.lane.b32.xlu0 %v575_v34, %s1577_s17  ;;  %v607_v55 = vpop.f32.mrb[27].mxu0  ;;  %v1886_v56 = vpop.f32.mrb[27].mxu1 }
 0x126   : > { %1007 = vrot.lane.b32.xlu1 %v462_v33, %s1578_s18 }
 0x128   : > { %v682_v57 = vpop.f32.mrb[28].mxu1  ;;  %v795_v58 = vpop.f32.mrb[28].mxu0 }
 0x129   : > { %1009 = vrot.lane.b32.xlu0 %v464_v35, %s1578_s18  ;;  %v684_v59 = vpop.f32.mrb[29].mxu1  ;;  %v1441_v60 = vpop.f32.mrb[29].mxu0 }
 0x12a   : > { %961 = vrot.lane.b32.xlu1 %v577_v36, %s1577_s17 }
 0x12c   : > { %v688_v61 = vpop.f32.mrb[30].mxu1  ;;  %v799_v62 = vpop.f32.mrb[30].mxu0 }
 0x12d   : > { %1059 = vrot.lane.b32.xlu0 %v468_v37, %s1571_s7  ;;  %v690_v63 = vpop.f32.mrb[31].mxu1  ;;  %v1444_v1 = vpop.f32.mrb[31].mxu0 }
 0x12e   : > { %1011 = vrot.lane.b32.xlu1 %v581_v38, %s1578_s18 }
 0x130   : > { %v804_v3 = vpop.f32.mrb[32].mxu0  ;;  %v694_v5 = vpop.f32.mrb[32].mxu1 }
 0x131   : > { %1013 = vrot.lane.b32.xlu0 %v583_v40, %s1578_s18  ;;  %v1447_v6 = vpop.f32.mrb[33].mxu0  ;;  %v696_v7 = vpop.f32.mrb[33].mxu1 }
 0x132   : > { %1061 = vrot.lane.b32.xlu1 %v470_v39, %s1571_s7 }
 0x134   : > { %v700_v8 = vpop.f32.mrb[34].mxu1  ;;  %v809_v0 = vpop.f32.mrb[34].mxu0 }
 0x135   : > { %1063 = vrot.lane.b32.xlu0 %v587_v42, %s1571_s7  ;;  %v702_v9 = vpop.f32.mrb[35].mxu1  ;;  %v1450_v10 = vpop.f32.mrb[35].mxu0 }
 0x136   : > { %1111 = vrot.lane.b32.xlu1 %v474_v41, %s1573_s13 }
 0x138   : > { %v814_v11 = vpop.f32.mrb[36].mxu0  ;;  %v706_v12 = vpop.f32.mrb[36].mxu1 }
 0x139   : > { %1113 = vrot.lane.b32.xlu0 %v476_v43, %s1573_s13  ;;  %v1453_v13 = vpop.f32.mrb[37].mxu0  ;;  %v708_v14 = vpop.f32.mrb[37].mxu1 }
 0x13a   : > { %1065 = vrot.lane.b32.xlu1 %v589_v44, %s1571_s7 }
 0x13c   : > { %v712_v15 = vpop.f32.mrb[38].mxu1  ;;  %v819_v16 = vpop.f32.mrb[38].mxu0 }
 0x13d   : > { %1163 = vrot.lane.b32.xlu0 %v480_v45, %s1575_s15  ;;  %v714_v17 = vpop.f32.mrb[39].mxu1  ;;  %v1456_v20 = vpop.f32.mrb[39].mxu0 }
 0x13e   : > { %1115 = vrot.lane.b32.xlu1 %v593_v46, %s1573_s13 }
 0x140   : > { %v824_v21 = vpop.f32.mrb[40].mxu0  ;;  %v718_v23 = vpop.f32.mrb[40].mxu1 }
 0x141   : > { %1117 = vrot.lane.b32.xlu0 %v595_v48, %s1573_s13  ;;  %v1459_v25 = vpop.f32.mrb[41].mxu0  ;;  %v720_v26 = vpop.f32.mrb[41].mxu1 }
 0x142   : > { %1165 = vrot.lane.b32.xlu1 %v482_v47, %s1575_s15 }
 0x144   : > { %v724_v27 = vpop.f32.mrb[42].mxu1  ;;  %v829_v28 = vpop.f32.mrb[42].mxu0 }
 0x145   : > { %1167 = vrot.lane.b32.xlu0 %v599_v50, %s1575_s15  ;;  %v726_v29 = vpop.f32.mrb[43].mxu1  ;;  %v1462_v30 = vpop.f32.mrb[43].mxu0 }
 0x146   : > { %1215 = vrot.lane.b32.xlu1 %v486_v49, %s1576_s16 }
 0x148   : > { %v834_v31 = vpop.f32.mrb[44].mxu0 }
 0x149   : > { %1217 = vrot.lane.b32.xlu0 %v488_v51, %s1576_s16  ;;  %v1465_v32 = vpop.f32.mrb[45].mxu0 }
 0x14a   : > { %1169 = vrot.lane.b32.xlu1 %v601_v52, %s1575_s15 }
 0x14d   : > { %1221 = vrot.lane.b32.xlu0 %v607_v55, %s1576_s16 }
 0x14e   : > { %1219 = vrot.lane.b32.xlu1 %v605_v53, %s1576_s16 }
 0x151   : > { %859 = vrot.lane.b32.xlu0 %v682_v57, %s1572_s8 }
 0x152   : > { %861 = vrot.lane.b32.xlu1 %v684_v59, %s1572_s8 }
 0x155   : > { %863 = vrot.lane.b32.xlu0 %v799_v62, %s1572_s8 }
 0x156   : > { %911 = vrot.lane.b32.xlu1 %v688_v61, %s1574_s14 }
 0x159   : > { %913 = vrot.lane.b32.xlu0 %v690_v63, %s1574_s14 }
 0x15a   : > { %915 = vrot.lane.b32.xlu1 %v804_v3, %s1574_s14 }
 0x15d   : > { %963 = vrot.lane.b32.xlu0 %v694_v5, %s1577_s17 }
 0x15e   : > { %965 = vrot.lane.b32.xlu1 %v696_v7, %s1577_s17 }
 0x161   : > { %967 = vrot.lane.b32.xlu0 %v809_v0, %s1577_s17 }
 0x162   : > { %1015 = vrot.lane.b32.xlu1 %v700_v8, %s1578_s18 }
 0x163   : > { %v1056_v33 = vpop.permute.xlu0 %1055 }
 0x164   : > { %v1919_v34 = vpop.permute.xlu1 %1057 }
 0x165   : > { %1017 = vrot.lane.b32.xlu0 %v702_v9, %s1578_s18  ;;  %v1074_v61 = vsel %vm1073_vm6, %v1056_v33, %v1919_v34 }
 0x166   : > { %1019 = vrot.lane.b32.xlu1 %v814_v11, %s1578_s18 }
 0x167   : > { %v848_v35 = vpop.permute.xlu0 %847 }
 0x168   : > { %v1108_v36 = vpop.permute.xlu1 %1107 }
 0x169   : > { %1067 = vrot.lane.b32.xlu0 %v706_v12, %s1571_s7 }
 0x16a   : > { %1069 = vrot.lane.b32.xlu1 %v708_v14, %s1571_s7 }
 0x16b   : > { %v850_v37 = vpop.permute.xlu0 %849 }
 0x16c   : > { %v900_v38 = vpop.permute.xlu1 %899  ;;  %v866_v46 = vsel %vm865_vm2, %v848_v35, %v850_v37 }
 0x16d   : > { %1071 = vrot.lane.b32.xlu0 %v819_v16, %s1571_s7  ;;  %v882_v49 = vadd.f32 %v866_v46, %v1845_v2 }
 0x16e   : > { %1119 = vrot.lane.b32.xlu1 %v712_v15, %s1573_s13 }
 0x16f   : > { %v1927_v39 = vpop.permute.xlu0 %1109 }
 0x170   : > { %v1929_v40 = vpop.permute.xlu1 %1161  ;;  %v1126_v63 = vsel %vm1125_vm7, %v1108_v36, %v1927_v39 }
 0x171   : > { %1121 = vrot.lane.b32.xlu0 %v714_v17, %s1573_s13 }
 0x172   : > { %1123 = vrot.lane.b32.xlu1 %v824_v21, %s1573_s13 }
 0x173   : > { %v1160_v41 = vpop.permute.xlu0 %1159 }
 0x174   : > { %v1212_v42 = vpop.permute.xlu1 %1211  ;;  %v1178_v5 = vsel %vm1177_vm8, %v1160_v41, %v1929_v40 }
 0x175   : > { %1171 = vrot.lane.b32.xlu0 %v718_v23, %s1575_s15 }
 0x176   : > { %1173 = vrot.lane.b32.xlu1 %v720_v26, %s1575_s15 }
 0x177   : > { %v902_v43 = vpop.permute.xlu0 %901 }
 0x178   : > { %v954_v44 = vpop.permute.xlu1 %953  ;;  %v918_v48 = vsel %vm917_vm3, %v900_v38, %v902_v43 }
 0x179   : > { %1175 = vrot.lane.b32.xlu0 %v829_v28, %s1575_s15  ;;  %v934_v53 = vadd.f32 %v918_v48, %v882_v49 }
 0x17a   : > { %1223 = vrot.lane.b32.xlu1 %v724_v27, %s1576_s16 }
 0x17b   : > { %v952_v45 = vpop.permute.xlu0 %951 }
 0x17c   : > { %v1004_v47 = vpop.permute.xlu1 %1003  ;;  %v970_v51 = vsel %vm969_vm4, %v952_v45, %v954_v44 }
 0x17d   : > { %1225 = vrot.lane.b32.xlu0 %v726_v29, %s1576_s16  ;;  %v986_v55 = vadd.f32 %v970_v51, %v934_v53 }
 0x17e   : > { %1227 = vrot.lane.b32.xlu1 %v834_v31, %s1576_s16 }
 0x17f   : > { %v1942_v50 = vpop.permute.xlu0 %1213 }
 0x180   : > { %v852_v52 = vpop.permute.xlu1 %851  ;;  %v1230_v8 = vsel %vm1229_vm9, %v1212_v42, %v1942_v50 }
 0x181   : > { %v867_v15 = vsel %vm865_vm2, %v850_v37, %v852_v52 }
 0x182   : > { %v883_v21 = vadd.f32 %v867_v15, %v1848_v4 }
 0x183   : > { %v1006_v57 = vpop.permute.xlu0 %1005 }
 0x184   : > { %v1022_v58 = vsel %vm1021_vm5, %v1004_v47, %v1006_v57  ;;  %v854_v59 = vpop.permute.xlu1 %853 }
 0x185   : > { %v1038_v60 = vadd.f32 %v1022_v58, %v986_v55 }
 0x187   : > { %v1090_v2 = vadd.f32 %v1074_v61, %v1038_v60  ;;  %v856_v62 = vpop.permute.xlu0 %855 }
 0x188   : > { %v904_v1 = vpop.permute.xlu1 %903  ;;  %v869_v53 = vsel %vm865_vm2, %v854_v59, %v856_v62 }
 0x189   : > { %v1142_v3 = vadd.f32 %v1126_v63, %v1090_v2  ;;  %v919_v17 = vsel %vm917_vm3, %v902_v43, %v904_v1 }
 0x18a   : > { %v935_v25 = vadd.f32 %v919_v17, %v883_v21 }
 0x18b   : > { %v1194_v6 = vadd.f32 %v1178_v5, %v1142_v3  ;;  %v906_v7 = vpop.permute.xlu0 %905 }
 0x18c   : > { %v1955_v0 = vpop.permute.xlu1 %857  ;;  %v920_v46 = vsel %vm917_vm3, %v904_v1, %v906_v7 }
 0x18d   : > { %v1246_v9 = vadd.f32 %v1230_v8, %v1194_v6  ;;  %v870_v55 = vsel %vm865_vm2, %v856_v62, %v1955_v0 }
 0x18e   : > { %v886_v2 = vadd.f32 %v870_v55, %v1863_v22 }
 0x18f   : > { %v1254_v10 = vmax.f32 %v1246_v9, 0.0  ;;  %v956_v11 = vpop.permute.xlu0 %955 }
 0x190   : > { %v908_v12 = vpop.permute.xlu1 %907  ;;  %v971_v23 = vsel %vm969_vm4, %v954_v44, %v956_v11  ;;  %v868_v44 = vsel %vm865_vm2, %v852_v52, %v854_v59 }
 0x191   : > { %1262 = vst [vmem:[%s1960_s22] sm:$0xff] %v1254_v10  ;;  %v987_v29 = vadd.f32 %v971_v23, %v935_v25  ;;  %v921_v58 = vsel %vm917_vm3, %v906_v7, %v908_v12 }
 0x193   : > { %v1963_v13 = vpop.permute.xlu0 %909 }
 0x194   : > { %v958_v14 = vpop.permute.xlu1 %957 }
 0x195   : > { %v972_v48 = vsel %vm969_vm4, %v956_v11, %v958_v14 }
 0x197   : > { %v960_v16 = vpop.permute.xlu0 %959 }
 0x198   : > { %v1008_v20 = vpop.permute.xlu1 %1007  ;;  %v973_v62 = vsel %vm969_vm4, %v958_v14, %v960_v16 }
 0x199   : > { %v1023_v27 = vsel %vm1021_vm5, %v1006_v57, %v1008_v20 }
 0x19a   : > { %v1039_v30 = vadd.f32 %v1023_v27, %v987_v29 }
 0x19b   : > { %v1010_v26 = vpop.permute.xlu0 %1009 }
 0x19c   : > { %v1970_v28 = vpop.permute.xlu1 %961  ;;  %v1024_v57 = vsel %vm1021_vm5, %v1008_v20, %v1010_v26 }
 0x19d   : > { %v974_v3 = vsel %vm969_vm4, %v960_v16, %v1970_v28 }
 0x19f   : > { %v1060_v31 = vpop.permute.xlu0 %1059 }
 0x1a0   : > { %v1075_v32 = vsel %vm1073_vm6, %v1919_v34, %v1060_v31  ;;  %v1012_v33 = vpop.permute.xlu1 %1011  ;;  %v884_v34 = vadd.f32 %v868_v44, %v1857_v18  ;;  %v922_v18 = vsel %vm917_vm3, %v908_v12, %v1963_v13 }
 0x1a1   : > { %v1091_v35 = vadd.f32 %v1075_v32, %v1039_v30  ;;  %v938_v6 = vadd.f32 %v922_v18, %v886_v2  ;;  %v1025_v8 = vsel %vm1021_vm5, %v1010_v26, %v1012_v33 }
 0x1a3   : > { %v1974_v36 = vpop.permute.xlu0 %1013  ;;  %v990_v11 = vadd.f32 %v974_v3, %v938_v6 }
 0x1a4   : > { %v1062_v37 = vpop.permute.xlu1 %1061 }
 0x1a5   : > { %v1076_v59 = vsel %vm1073_vm6, %v1060_v31, %v1062_v37 }
 0x1a7   : > { %v1064_v4 = vpop.permute.xlu0 %1063 }
 0x1a8   : > { %v1112_v38 = vpop.permute.xlu1 %1111  ;;  %v1077_v15 = vsel %vm1073_vm6, %v1062_v37, %v1064_v4 }
 0x1a9   : > { %v1127_v41 = vsel %vm1125_vm7, %v1927_v39, %v1112_v38  ;;  %v936_v39 = vadd.f32 %v920_v46, %v884_v34 }
 0x1aa   : > { %v1143_v42 = vadd.f32 %v1127_v41, %v1091_v35 }
 0x1ab   : > { %v1114_v43 = vpop.permute.xlu0 %1113  ;;  %v988_v60 = vadd.f32 %v972_v48, %v936_v39 }
 0x1ac   : > { %v1979_v45 = vpop.permute.xlu1 %1065  ;;  %v1128_v7 = vsel %vm1125_vm7, %v1112_v38, %v1114_v43 }
 0x1ad   : > { %v1040_v1 = vadd.f32 %v1024_v57, %v988_v60  ;;  %v1078_v16 = vsel %vm1073_vm6, %v1064_v4, %v1979_v45 }
 0x1af   : > { %v1164_v47 = vpop.permute.xlu0 %1163  ;;  %v1092_v9 = vadd.f32 %v1076_v59, %v1040_v1 }
 0x1b0   : > { %v1179_v49 = vsel %vm1177_vm8, %v1929_v40, %v1164_v47  ;;  %v1116_v51 = vpop.permute.xlu1 %1115  ;;  %v885_v40 = vadd.f32 %v869_v53, %v1860_v19  ;;  %v1026_v19 = vsel %vm1021_vm5, %v1012_v33, %v1974_v36 }
 0x1b1   : > { %v1195_v52 = vadd.f32 %v1179_v49, %v1143_v42  ;;  %v1144_v17 = vadd.f32 %v1128_v7, %v1092_v9  ;;  %v1042_v23 = vadd.f32 %v1026_v19, %v990_v11  ;;  %v1129_v26 = vsel %vm1125_vm7, %v1114_v43, %v1116_v51 }
 0x1b2   : > { %v937_v5 = vadd.f32 %v921_v58, %v885_v40 }
 0x1b3   : > { %v1993_v61 = vpop.permute.xlu0 %1117  ;;  %v1094_v32 = vadd.f32 %v1078_v16, %v1042_v23 }
 0x1b4   : > { %v1166_v63 = vpop.permute.xlu1 %1165  ;;  %v989_v10 = vadd.f32 %v973_v62, %v937_v5  ;;  %v1130_v27 = vsel %vm1125_vm7, %v1116_v51, %v1993_v61 }
 0x1b5   : > { %v1180_v12 = vsel %vm1177_vm8, %v1164_v47, %v1166_v63  ;;  %v1146_v42 = vadd.f32 %v1130_v27, %v1094_v32 }
 0x1b6   : > { %v1041_v21 = vadd.f32 %v1025_v8, %v989_v10  ;;  %v1196_v29 = vadd.f32 %v1180_v12, %v1144_v17 }
 0x1b7   : > { %v1168_v22 = vpop.permute.xlu0 %1167 }
 0x1b8   : > { %v1216_v14 = vpop.permute.xlu1 %1215  ;;  %v1093_v31 = vadd.f32 %v1077_v15, %v1041_v21 }
 0x1b9   : > { %v1231_v20 = vsel %vm1229_vm9, %v1942_v50, %v1216_v14  ;;  %v1181_v50 = vsel %vm1177_vm8, %v1166_v63, %v1168_v22 }
 0x1ba   : > { %v1247_v25 = vadd.f32 %v1231_v20, %v1195_v52  ;;  %v1145_v41 = vadd.f32 %v1129_v26, %v1093_v31 }
 0x1bb   : > { %v1218_v30 = vpop.permute.xlu0 %1217 }
 0x1bc   : > { %v1255_v33 = vmax.f32 %v1247_v25, 0.0  ;;  %v1232_v35 = vsel %vm1229_vm9, %v1216_v14, %v1218_v30  ;;  %v2015_v37 = vpop.permute.xlu1 %1169  ;;  %v1197_v46 = vadd.f32 %v1181_v50, %v1145_v41 }
 0x1bd   : > { %v1248_v4 = vadd.f32 %v1232_v35, %v1196_v29  ;;  %v1182_v38 = vsel %vm1177_vm8, %v1168_v22, %v2015_v37 }
 0x1be   : > { %1263 = vst [vmem:[%s1960_s22 + $0x8] sm:$0xff] %v1255_v33  ;;  %v1198_v34 = vadd.f32 %v1182_v38, %v1146_v42 }
 0x1bf   : > { %v1256_v43 = vmax.f32 %v1248_v4, 0.0  ;;  %v2021_v44 = vpop.permute.xlu0 %1221 }
 0x1c0   : > { %v1220_v47 = vpop.permute.xlu1 %1219 }
 0x1c1   : > { %1264 = vst [vmem:[%s1960_s22 + $0x10] sm:$0xff] %v1256_v43  ;;  %v1233_v48 = vsel %vm1229_vm9, %v1218_v30, %v1220_v47  ;;  %v1234_v49 = vsel %vm1229_vm9, %v1220_v47, %v2021_v44 }
 0x1c2   : > { %v1249_v51 = vadd.f32 %v1233_v48, %v1197_v46  ;;  %v1250_v53 = vadd.f32 %v1234_v49, %v1198_v34 }
 0x1c3   : > { %v860_v39 = vpop.permute.xlu0 %859 }
 0x1c4   : > { %v1257_v55 = vmax.f32 %v1249_v51, 0.0  ;;  %v1258_v52 = vmax.f32 %v1250_v53, 0.0  ;;  %v871_v57 = vsel %vm865_vm2, %v1955_v0, %v860_v39  ;;  %v862_v58 = vpop.permute.xlu1 %861 }
 0x1c5   : > { %v887_v18 = vadd.f32 %v871_v57, %v1866_v24  ;;  %v872_v11 = vsel %vm865_vm2, %v860_v39, %v862_v58 }
 0x1c6   : > { %1265 = vst [vmem:[%s1960_s22 + $0x18] sm:$0xff] %v1257_v55  ;;  %1266 = vst [vmem:[%s1960_s22 + $0x20] sm:$0xff] %v1258_v52  ;;  %v888_v15 = vadd.f32 %v872_v11, %v1883_v54 }
 0x1c7   : > { %v864_v60 = vpop.permute.xlu0 %863 }
 0x1c8   : > { %v912_v40 = vpop.permute.xlu1 %911  ;;  %v873_v14 = vsel %vm865_vm2, %v862_v58, %v864_v60 }
 0x1c9   : > { %v923_v2 = vsel %vm917_vm3, %v1963_v13, %v912_v40 }
 0x1ca   : > { %v939_v59 = vadd.f32 %v923_v2, %v887_v18 }
 0x1cb   : > { %v914_v63 = vpop.permute.xlu0 %913 }
 0x1cc   : > { %v916_v62 = vpop.permute.xlu1 %915 }
 0x1cd   : > { %v925_v17 = vsel %vm917_vm3, %v914_v63, %v916_v62 }
 0x1cf   : > { %v964_v1 = vpop.permute.xlu0 %963 }
 0x1d0   : > { %v975_v3 = vsel %vm969_vm4, %v1970_v28, %v964_v1  ;;  %v966_v5 = vpop.permute.xlu1 %965  ;;  %v924_v28 = vsel %vm917_vm3, %v912_v40, %v914_v63 }
 0x1d1   : > { %v991_v6 = vadd.f32 %v975_v3, %v939_v59  ;;  %v976_v20 = vsel %vm969_vm4, %v964_v1, %v966_v5  ;;  %v940_v23 = vadd.f32 %v924_v28, %v888_v15 }
 0x1d3   : > { %v968_v0 = vpop.permute.xlu0 %967  ;;  %v992_v30 = vadd.f32 %v976_v20, %v940_v23 }
 0x1d4   : > { %v1016_v7 = vpop.permute.xlu1 %1015  ;;  %v977_v25 = vsel %vm969_vm4, %v966_v5, %v968_v0 }
 0x1d5   : > { %v1027_v24 = vsel %vm1021_vm5, %v1974_v36, %v1016_v7  ;;  %v889_v36 = vadd.f32 %v873_v14, %v1886_v56 }
 0x1d6   : > { %v1043_v8 = vadd.f32 %v1027_v24, %v991_v6 }
 0x1d7   : > { %v1018_v19 = vpop.permute.xlu0 %1017  ;;  %v941_v27 = vadd.f32 %v925_v17, %v889_v36 }
 0x1d8   : > { %v1020_v9 = vpop.permute.xlu1 %1019  ;;  %v1028_v29 = vsel %vm1021_vm5, %v1016_v7, %v1018_v19 }
 0x1d9   : > { %v1029_v54 = vsel %vm1021_vm5, %v1018_v19, %v1020_v9  ;;  %v993_v56 = vadd.f32 %v977_v25, %v941_v27  ;;  %v1044_v4 = vadd.f32 %v1028_v29, %v992_v30 }
 0x1db   : > { %v1068_v22 = vpop.permute.xlu0 %1067  ;;  %v1045_v41 = vadd.f32 %v1029_v54, %v993_v56 }
 0x1dc   : > { %v1070_v10 = vpop.permute.xlu1 %1069  ;;  %v1079_v26 = vsel %vm1073_vm6, %v1979_v45, %v1068_v22 }
 0x1dd   : > { %v1095_v33 = vadd.f32 %v1079_v26, %v1043_v8  ;;  %v1080_v35 = vsel %vm1073_vm6, %v1068_v22, %v1070_v10 }
 0x1de   : > { %v1096_v46 = vadd.f32 %v1080_v35, %v1044_v4 }
 0x1df   : > { %v1072_v13 = vpop.permute.xlu0 %1071 }
 0x1e0   : > { %v1120_v12 = vpop.permute.xlu1 %1119  ;;  %v1081_v38 = vsel %vm1073_vm6, %v1070_v10, %v1072_v13 }
 0x1e1   : > { %v1131_v31 = vsel %vm1125_vm7, %v1993_v61, %v1120_v12  ;;  %v1097_v47 = vadd.f32 %v1081_v38, %v1045_v41 }
 0x1e2   : > { %v1147_v42 = vadd.f32 %v1131_v31, %v1095_v33 }
 0x1e3   : > { %v1122_v16 = vpop.permute.xlu0 %1121 }
 0x1e4   : > { %v1124_v21 = vpop.permute.xlu1 %1123  ;;  %v1132_v43 = vsel %vm1125_vm7, %v1120_v12, %v1122_v16 }
 0x1e5   : > { %v1133_v34 = vsel %vm1125_vm7, %v1122_v16, %v1124_v21  ;;  %v1148_v53 = vadd.f32 %v1132_v43, %v1096_v46 }
 0x1e6   : > { %v1149_v55 = vadd.f32 %v1133_v34, %v1097_v47 }
 0x1e7   : > { %v1172_v32 = vpop.permute.xlu0 %1171 }
 0x1e8   : > { %v1174_v50 = vpop.permute.xlu1 %1173  ;;  %v1183_v45 = vsel %vm1177_vm8, %v2015_v37, %v1172_v32 }
 0x1e9   : > { %v1199_v48 = vadd.f32 %v1183_v45, %v1147_v42  ;;  %v1184_v49 = vsel %vm1177_vm8, %v1172_v32, %v1174_v50 }
 0x1ea   : > { %v1200_v57 = vadd.f32 %v1184_v49, %v1148_v53 }
 0x1eb   : > { %v1176_v61 = vpop.permute.xlu0 %1175 }
 0x1ec   : > { %v1224_v51 = vpop.permute.xlu1 %1223  ;;  %v1185_v39 = vsel %vm1177_vm8, %v1174_v50, %v1176_v61 }
 0x1ed   : > { %v1235_v37 = vsel %vm1229_vm9, %v2021_v44, %v1224_v51  ;;  %v1201_v18 = vadd.f32 %v1185_v39, %v1149_v55 }
 0x1ee   : > { %v1251_v52 = vadd.f32 %v1235_v37, %v1199_v48 }
 0x1ef   : > { %v1226_v58 = vpop.permute.xlu0 %1225 }
 0x1f0   : > { %v1259_v60 = vmax.f32 %v1251_v52, 0.0  ;;  %v1236_v40 = vsel %vm1229_vm9, %v1224_v51, %v1226_v58  ;;  %v1228_v2 = vpop.permute.xlu1 %1227 }
 0x1f1   : > { %v1252_v59 = vadd.f32 %v1236_v40, %v1200_v57  ;;  %v1237_v63 = vsel %vm1229_vm9, %v1226_v58, %v1228_v2 }
 0x1f2   : > { %1267 = vst [vmem:[%s1960_s22 + $0x28] sm:$0xff] %v1259_v60  ;;  %v1253_v62 = vadd.f32 %v1237_v63, %v1201_v18 }
 0x1f3   : > { %v1260_v1 = vmax.f32 %v1252_v59, 0.0 }
 0x1f4   : > { %v1261_v3 = vmax.f32 %v1253_v62, 0.0 }
 0x1f5   : > { %1268 = vst [vmem:[%s1960_s22 + $0x30] sm:$0xff] %v1260_v1 }
 0x1f6   : > { %1269 = vst [vmem:[%s1960_s22 + $0x38] sm:$0xff] %v1261_v3 }
 0x1f7 PF: > { %s12_s11 = sadd.s32 1, %s1566_s11   ;;  %s2079_s9 = smov %s1562_s10 }
 0x1f8   : > { %p9_p5 = scmp.ge.s32.totalorder %s12_s11, 4   ;;  %s2080_s10 = smov %s2082_s12 }
 0x1fa   :  { %11 = sbr.rel (!%p9_p5) target bundleno = 2 (0x2), region = 58 }

</bundles_post_ra>
